<compile_context>
chip_gen: v6e
topology: v6e:2x2x1
jax: 0.10.0
libtpu: 0.0.40
codegen_flags: <defaults>
</compile_context>

<pallas_src>
import functools
import math

import jax
import jax.numpy as jnp
import numpy as np
from jax.experimental import pallas as pl
from jax.experimental.pallas import tpu as pltpu


# -----------------------------------------------------------------------------
# Pallas kernel: one (batch element, L-chunk) tile of the MambaBlock forward.
# Grid = (Bsz, n_L_chunks); state (conv tail + SSM h) carried across L chunks
# through VMEM scratch, reset at lc == 0.
# -----------------------------------------------------------------------------
def mamba_block_kernel(
    x_ref,        # (1, T_L, d_model) f32
    w_in_ref,     # (d_model, d_inner)  bf16, in_proj weight pre-transposed
    b_in_ref,     # (1, d_inner) f32
    conv_w_ref,   # (K, d_inner) f32    depthwise taps
    conv_b_ref,   # (1, d_inner) f32
    w_x_ref,      # (d_inner, seg_r + 2*seg_s) bf16  fused+lane-padded x_proj
    w_dt_ref,     # (dt_rank, d_inner)  bf16, dt_proj weight pre-transposed
    b_dt_ref,     # (1, d_inner) f32
    dtln_ref,     # (1, dt_rank) f32
    Bln_ref,      # (1, d_state) f32
    Cln_ref,      # (1, d_state) f32
    A_logT_ref,   # (d_state, d_inner) f32   A_log transposed
    D_ref,        # (1, d_inner) f32
    w_out_ref,    # (d_inner, d_model) bf16, out_proj weight pre-transposed
    b_out_ref,    # (1, d_model) f32
    out_ref,      # (1, T_L, d_model) f32
    pad_scr,      # VMEM (8 + T_L, d_inner)  conv input, 8-row front pad (carry)
    xs_scr,       # VMEM (T_L, d_inner)      silu(conv(x))
    dt_scr,       # VMEM (T_L, d_inner)      dt
    B_scr,        # VMEM (T_L, d_state)
    C_scr,        # VMEM (T_L, d_state)
    y_scr,        # VMEM (T_L, d_inner)
    h_scr,        # VMEM (d_state, d_inner)  SSM state carried across L chunks
    dA_scr,       # VMEM (T, d_state, TD)    bulk exp(dt*A) per chunk
    bx_scr,       # VMEM (T, d_state, TD)    bulk dt*B*x per chunk
    hs_scr,       # VMEM (T, d_state, TD)    per-step h stack per chunk
    *,
    eps,
    chunk,        # scan chunk T (divides T_L)
    seg_r,        # lane-aligned width of the delta segment in the fused x_proj
    seg_s,        # lane-aligned width of each B / C segment
    di_tile,      # d_inner tile width for the scan (divides d_inner)
):
    T_L = x_ref.shape[1]
    d_inner = D_ref.shape[1]
    K = conv_w_ref.shape[0]
    R = dtln_ref.shape[1]          # dt_rank
    S = Bln_ref.shape[1]           # d_state
    lc = pl.program_id(1)

    # ---- in_proj (bf16 MXU inputs, f32 accumulation) ----
    x_b = x_ref[0].astype(jnp.bfloat16)                            # (T_L, d_model)
    xz = jnp.dot(x_b, w_in_ref[...],
                 preferred_element_type=jnp.float32) + b_in_ref[...]

    # ---- causal depthwise conv1d with cross-chunk carry ----
    # pad_scr layout: rows [0,8) = front pad (last K-1 rows hold the previous
    # chunk's tail), rows [8, 8+T_L) = current chunk.  Tap k reads rows
    # [8-(K-1)+k, 8-(K-1)+k+T_L).
    @pl.when(lc == 0)
    def _():
        pad_scr[0:8, :] = jnp.zeros((8, d_inner), jnp.float32)     # zero history
        h_scr[...] = jnp.zeros((S, d_inner), jnp.float32)          # zero SSM state

    @pl.when(lc > 0)
    def _():
        # carry the previous chunk's last K-1 rows into the front-pad slot
        pad_scr[8 - (K - 1):8, :] = pad_scr[8 + T_L - (K - 1):8 + T_L, :]

    pad_scr[8:8 + T_L, :] = xz
    xc = conv_b_ref[...]                                           # (1, d_inner)
    for k in range(K):
        xc = xc + pad_scr[8 - (K - 1) + k:8 - (K - 1) + k + T_L, :] * conv_w_ref[k:k + 1, :]

    # ---- SiLU ----
    xs = xc * jax.nn.sigmoid(xc)                                   # (T_L, d_inner) f32

    # ---- fused, lane-padded x_proj: one matmul, aligned column slices ----
    dbc = jnp.dot(xs.astype(jnp.bfloat16), w_x_ref[...],
                  preferred_element_type=jnp.float32)              # (T_L, seg_r+2*seg_s)

    def rmsnorm(v, w):
        return v * jax.lax.rsqrt(jnp.mean(v * v, axis=-1, keepdims=True) + eps) * w

    dl = rmsnorm(dbc[:, 0:R], dtln_ref[...])                       # (T_L, dt_rank)
    Bm = rmsnorm(dbc[:, seg_r:seg_r + S], Bln_ref[...])            # (T_L, d_state)
    Cm = rmsnorm(dbc[:, seg_r + seg_s:seg_r + seg_s + S], Cln_ref[...])

    # ---- dt_proj + softplus ----
    dt = jax.nn.softplus(
        jnp.dot(dl.astype(jnp.bfloat16), w_dt_ref[...],
                preferred_element_type=jnp.float32) + b_dt_ref[...])

    # Stage per-timestep streams in VMEM so the scan loads chunk slabs.
    xs_scr[...] = xs
    dt_scr[...] = dt
    B_scr[...] = Bm
    C_scr[...] = Cm

    A = -jnp.exp(A_logT_ref[...])                                  # (S, d_inner) f32
    Dp = D_ref[...]                                                # (1, d_inner)

    # ---- chunked selective scan, d_inner tiled ----
    T = chunk
    n_chunks = T_L // T
    TD = di_tile
    n_di = d_inner // TD

    for di in range(n_di):                                         # static tile loop
        c0 = di * TD
        A_t = A[:, c0:c0 + TD]                                     # (S, TD)
        D_t = Dp[:, c0:c0 + TD]                                    # (1, TD)

        def chunk_body(c, h):                                      # h: (S, TD)
            start = pl.multiple_of(c * T, T)
            xs_c = xs_scr[pl.ds(start, T), pl.ds(c0, TD)]          # (T, TD)
            dt_c = dt_scr[pl.ds(start, T), pl.ds(c0, TD)]          # (T, TD)
            B_c = B_scr[pl.ds(start, T), :]                        # (T, S)
            C_c = C_scr[pl.ds(start, T), :]                        # (T, S)

            # Bulk per-chunk precompute (EUP burst + VPU), staged in VMEM.
            dA_scr[...] = jnp.exp(dt_c[:, None, :] * A_t[None, :, :])        # (T,S,TD)
            bx_scr[...] = B_c[:, :, None] * (dt_c * xs_c)[:, None, :]        # (T,S,TD)

            # Unrolled recurrence: critical path is 2 VALU ops per element.
            h_cur = h
            for tt in range(T):
                h_cur = dA_scr[tt] * h_cur + bx_scr[tt]
                hs_scr[tt] = h_cur                                 # off critical path

            # Bulk C·h (sublane reduce) + D skip, one lane-dense store per chunk.
            y_c = jnp.sum(C_c[:, :, None] * hs_scr[...], axis=1) + D_t * xs_c
            y_scr[pl.ds(start, T), pl.ds(c0, TD)] = y_c
            return h_cur

        h_fin = jax.lax.fori_loop(0, n_chunks, chunk_body,
                                  h_scr[:, pl.ds(c0, TD)])
        h_scr[:, pl.ds(c0, TD)] = h_fin                            # carry to next L chunk

    # ---- out_proj (bf16 MXU inputs, f32 accumulation) ----
    out = jnp.dot(y_scr[...].astype(jnp.bfloat16), w_out_ref[...],
                  preferred_element_type=jnp.float32) + b_out_ref[...]
    out_ref[0] = out.astype(out_ref.dtype)


# -----------------------------------------------------------------------------
# Wrapper
# -----------------------------------------------------------------------------
def mamba_block_forward(x, p, eps=1e-5, l_block=None, scan_chunk=None,
                        d_inner_tile=None):
    Bsz, L, d_model = x.shape
    d_inner, dt_rank = p["W_dt"].shape
    d_state = p["A_log"].shape[1]
    K = p["conv_w"].shape[0]

    # ---- L-chunk (grid) block: largest divisor of L that is a multiple of 8,
    # capped at 512; otherwise process the full sequence in one block.
    if l_block is None:
        l_block = L
        for cand in range(min(512, L), 7, -1):
            if L % cand == 0 and cand % 8 == 0:
                l_block = cand
                break
    assert L % l_block == 0
    n_lc = L // l_block

    # ---- scan chunk: largest divisor of l_block <= 32.
    if scan_chunk is None:
        scan_chunk = 1
        for cand in range(min(32, l_block), 0, -1):
            if l_block % cand == 0:
                scan_chunk = cand
                break
    assert l_block % scan_chunk == 0

    # ---- d_inner tile for the scan (128-lane multiple when possible).
    if d_inner_tile is None:
        d_inner_tile = d_inner
        for cand in (512, 384, 256, 128):
            if d_inner % cand == 0:
                d_inner_tile = cand
                break
    assert d_inner % d_inner_tile == 0

    # ---- fused x_proj weight, zero-padded so delta/B/C segments are 128-lane
    # aligned.  (d_inner, dt_rank+2*d_state) -> (d_inner, seg_r + 2*seg_s).
    SEG = 128
    seg_r = ((dt_rank + SEG - 1) // SEG) * SEG
    seg_s = ((d_state + SEG - 1) // SEG) * SEG
    Wx_T = p["W_x"].T.astype(jnp.float32)                      # (d_inner, R+2S)
    Wx_pad = jnp.zeros((d_inner, seg_r + 2 * seg_s), jnp.float32)
    Wx_pad = Wx_pad.at[:, 0:dt_rank].set(Wx_T[:, 0:dt_rank])
    Wx_pad = Wx_pad.at[:, seg_r:seg_r + d_state].set(
        Wx_T[:, dt_rank:dt_rank + d_state])
    Wx_pad = Wx_pad.at[:, seg_r + seg_s:seg_r + seg_s + d_state].set(
        Wx_T[:, dt_rank + d_state:dt_rank + 2 * d_state])

    def bf16(a):
        return a.astype(jnp.bfloat16)

    # Pre-transpose / fuse / cast weights here so the kernel never does `.T`
    # and all matmul operands are bf16 (f32 accumulation in-kernel).
    args = (
        x,
        bf16(p["W_in"].T),                   # (d_model, d_inner)
        p["b_in"][None, :].astype(jnp.float32),
        p["conv_w"].astype(jnp.float32),     # (K, d_inner)
        p["conv_b"][None, :].astype(jnp.float32),
        bf16(Wx_pad),                        # (d_inner, seg_r + 2*seg_s)
        bf16(p["W_dt"].T),                   # (dt_rank, d_inner)
        p["b_dt"][None, :].astype(jnp.float32),
        p["dtln"][None, :].astype(jnp.float32),
        p["Bln"][None, :].astype(jnp.float32),
        p["Cln"][None, :].astype(jnp.float32),
        p["A_log"].T.astype(jnp.float32),    # (d_state, d_inner)
        p["D"][None, :].astype(jnp.float32),
        bf16(p["W_out"].T),                  # (d_inner, d_model)
        p["b_out"][None, :].astype(jnp.float32),
    )

    # All parameters are 2-D and replicated across the (batch, L-chunk) grid.
    param_specs = [pl.BlockSpec(a.shape, lambda b, lc: (0, 0)) for a in args[1:]]

    scratch = [
        pltpu.VMEM((8 + l_block, d_inner), jnp.float32),             # pad (conv + carry)
        pltpu.VMEM((l_block, d_inner), jnp.float32),                 # xs
        pltpu.VMEM((l_block, d_inner), jnp.float32),                 # dt
        pltpu.VMEM((l_block, d_state), jnp.float32),                 # B
        pltpu.VMEM((l_block, d_state), jnp.float32),                 # C
        pltpu.VMEM((l_block, d_inner), jnp.float32),                 # y
        pltpu.VMEM((d_state, d_inner), jnp.float32),                 # h carry
        pltpu.VMEM((scan_chunk, d_state, d_inner_tile), jnp.float32),  # dA slab
        pltpu.VMEM((scan_chunk, d_state, d_inner_tile), jnp.float32),  # BX slab
        pltpu.VMEM((scan_chunk, d_state, d_inner_tile), jnp.float32),  # h stack
    ]

    # Explicit VMEM budget, clamped below the generation's physical capacity.
    param_bytes = sum(int(np.prod(a.shape)) * a.dtype.itemsize for a in args[1:])
    scratch_bytes = 4 * ((8 + l_block) * d_inner
                         + 3 * l_block * d_inner
                         + 2 * l_block * d_state
                         + d_state * d_inner
                         + 3 * scan_chunk * d_state * d_inner_tile)
    io_bytes = 4 * 2 * 2 * l_block * d_model            # double-buffered x + out
    est = param_bytes + scratch_bytes + io_bytes
    try:
        cap = int(getattr(pltpu.get_tpu_info(), "vmem_capacity_bytes", 64 << 20))
    except Exception:
        cap = 64 << 20                                   # v7x per-TC floor
    vmem_limit = int(min(int(cap * 0.9), max(32 << 20, 2 * est)))

    kernel = functools.partial(mamba_block_kernel, eps=eps, chunk=scan_chunk,
                               seg_r=seg_r, seg_s=seg_s, di_tile=d_inner_tile)
    out = pl.pallas_call(
        kernel,
        out_shape=jax.ShapeDtypeStruct((Bsz, L, d_model), jnp.float32),
        grid_spec=pltpu.PrefetchScalarGridSpec(
            num_scalar_prefetch=0,
            grid=(Bsz, n_lc),
            in_specs=[pl.BlockSpec((1, l_block, d_model),
                                   lambda b, lc: (b, lc, 0))] + param_specs,
            out_specs=pl.BlockSpec((1, l_block, d_model),
                                   lambda b, lc: (b, lc, 0)),
            scratch_shapes=scratch,
        ),
        compiler_params=pltpu.CompilerParams(
            # batch elements independent -> 2 TCs on v7x; L chunks carry state.
            dimension_semantics=("parallel", "arbitrary"),
            vmem_limit_bytes=vmem_limit,
        ),
    )(*args)
    return out


# -----------------------------------------------------------------------------
# Deterministic parameter construction (mirrors MambaBlock.__init__ shapes/inits)
# -----------------------------------------------------------------------------
def make_params(key, d_model, d_inner, dt_rank, d_state, d_conv,
                dt_min=0.001, dt_max=0.1, dt_init_floor=1e-4):
    ks = jax.random.split(key, 10)

    def unif(k, shape, scale):
        return jax.random.uniform(k, shape, jnp.float32, -scale, scale)

    p = {}
    p["W_in"] = unif(ks[0], (d_inner, d_model), 1.0 / math.sqrt(d_model))
    p["b_in"] = unif(ks[1], (d_inner,), 1.0 / math.sqrt(d_model))
    # PyTorch conv weight is (d_inner, 1, K); stored here as (K, d_inner).
    p["conv_w"] = unif(ks[2], (d_conv, d_inner), 1.0 / math.sqrt(d_conv))
    p["conv_b"] = unif(ks[3], (d_inner,), 1.0 / math.sqrt(d_conv))
    p["W_x"] = unif(ks[4], (dt_rank + 2 * d_state, d_inner), 1.0 / math.sqrt(d_inner))
    dt_init_std = dt_rank ** (-0.5)
    p["W_dt"] = unif(ks[5], (d_inner, dt_rank), dt_init_std)
    dt = jnp.exp(jax.random.uniform(ks[6], (d_inner,), jnp.float32)
                 * (math.log(dt_max) - math.log(dt_min)) + math.log(dt_min))
    dt = jnp.maximum(dt, dt_init_floor)
    p["b_dt"] = dt + jnp.log(-jnp.expm1(-dt))
    p["dtln"] = jnp.ones((dt_rank,), jnp.float32)
    p["Bln"] = jnp.ones((d_state,), jnp.float32)
    p["Cln"] = jnp.ones((d_state,), jnp.float32)
    p["A_log"] = jnp.log(jnp.tile(jnp.arange(1, d_state + 1, dtype=jnp.float32),
                                  (d_inner, 1)))                   # (d_inner, d_state)
    p["D"] = jnp.ones((d_inner,), jnp.float32)
    p["W_out"] = unif(ks[7], (d_model, d_inner), 1.0 / math.sqrt(d_inner))
    p["b_out"] = unif(ks[8], (d_model,), 1.0 / math.sqrt(d_inner))
    return p


# -----------------------------------------------------------------------------
# Pure-JAX f32 reference (for correctness check)
# -----------------------------------------------------------------------------
def reference_forward(x, p, eps=1e-5):
    Bsz, L, d_model = x.shape
    d_inner, dt_rank = p["W_dt"].shape
    d_state = p["A_log"].shape[1]
    K = p["conv_w"].shape[0]

    xz = jnp.einsum("bld,id->bli", x, p["W_in"]) + p["b_in"]
    xp = jnp.pad(xz, ((0, 0), (K - 1, 0), (0, 0)))
    xc = p["conv_b"]
    for k in range(K):
        xc = xc + xp[:, k:k + L, :] * p["conv_w"][k]
    xs = xc * jax.nn.sigmoid(xc)

    def rms(v, w):
        return v * jax.lax.rsqrt(jnp.mean(v * v, axis=-1, keepdims=True) + eps) * w

    wx_dt = p["W_x"][:dt_rank]
    wx_B = p["W_x"][dt_rank:dt_rank + d_state]
    wx_C = p["W_x"][dt_rank + d_state:]
    dl = rms(jnp.einsum("bli,ri->blr", xs, wx_dt), p["dtln"])
    Bm = rms(jnp.einsum("bli,si->bls", xs, wx_B), p["Bln"])
    Cm = rms(jnp.einsum("bli,si->bls", xs, wx_C), p["Cln"])
    dt = jax.nn.softplus(jnp.einsum("blr,ir->bli", dl, p["W_dt"]) + p["b_dt"])

    A = -jnp.exp(p["A_log"])                                       # (d_inner, d_state)
    dA = jnp.exp(dt[..., None] * A)                                # (B, L, d_inner, d_state)
    BX = dt[..., None] * Bm[:, :, None, :] * xs[..., None]

    h0 = jnp.zeros((Bsz, d_inner, d_state), jnp.float32)
    dA_t = jnp.moveaxis(dA, 1, 0)
    BX_t = jnp.moveaxis(BX, 1, 0)

    def step(h, inp):
        da, bx = inp
        h = da * h + bx
        return h, h

    _, hs = jax.lax.scan(step, h0, (dA_t, BX_t))
    hs = jnp.moveaxis(hs, 0, 1)                                    # (B, L, d_inner, d_state)
    y = jnp.einsum("blds,bls->bld", hs, Cm) + p["D"] * xs
    return jnp.einsum("bld,od->blo", y, p["W_out"]) + p["b_out"]


if __name__ == "__main__":
    # Shapes consistent with the module: d_model=32 -> d_inner=64,
    # dt_rank=ceil(32/16)=2, d_state=16, d_conv=3; batch=2, seq=16.
    d_model, d_state, d_conv = 32, 16, 3
    d_inner = 2 * d_model
    dt_rank = math.ceil(d_model / 16)
    Bsz, L = 2, 16

    key = jax.random.PRNGKey(0)
    k_x, k_p = jax.random.split(key)
    params = make_params(k_p, d_model, d_inner, dt_rank, d_state, d_conv)
    x = jax.random.normal(k_x, (Bsz, L, d_model), jnp.float32)

    # l_block=8 exercises the L-chunk grid axis (conv tail + SSM state carried
    # across chunks and reset per batch element); scan chunk is 8 within each.
    out = mamba_block_forward(x, params, l_block=8)
    jax.block_until_ready(out)

    ref = reference_forward(x, params)
    # Tolerance reflects bf16 MXU inputs (f32 accumulation) vs the f32 reference.
    np.testing.assert_allclose(np.asarray(out), np.asarray(ref), rtol=3e-2, atol=3e-2)

    print("KERNEL_OK")
</pallas_src>

<mosaic_0001>
module attributes {stable_mosaic.version = 11 : i64} {
  func.func @mamba_block_kernel(%arg0: i32, %arg1: i32, %arg2: memref<1x8x32xf32, #tpu.memory_space<vmem>>, %arg3: memref<32x64xbf16, #tpu.memory_space<vmem>>, %arg4: memref<1x64xf32, #tpu.memory_space<vmem>>, %arg5: memref<3x64xf32, #tpu.memory_space<vmem>>, %arg6: memref<1x64xf32, #tpu.memory_space<vmem>>, %arg7: memref<64x384xbf16, #tpu.memory_space<vmem>>, %arg8: memref<2x64xbf16, #tpu.memory_space<vmem>>, %arg9: memref<1x64xf32, #tpu.memory_space<vmem>>, %arg10: memref<1x2xf32, #tpu.memory_space<vmem>>, %arg11: memref<1x16xf32, #tpu.memory_space<vmem>>, %arg12: memref<1x16xf32, #tpu.memory_space<vmem>>, %arg13: memref<16x64xf32, #tpu.memory_space<vmem>>, %arg14: memref<1x64xf32, #tpu.memory_space<vmem>>, %arg15: memref<64x32xbf16, #tpu.memory_space<vmem>>, %arg16: memref<1x32xf32, #tpu.memory_space<vmem>>, %arg17: memref<1x8x32xf32, #tpu.memory_space<vmem>>, %arg18: memref<16x64xf32, #tpu.memory_space<vmem>>, %arg19: memref<8x64xf32, #tpu.memory_space<vmem>>, %arg20: memref<8x64xf32, #tpu.memory_space<vmem>>, %arg21: memref<8x16xf32, #tpu.memory_space<vmem>>, %arg22: memref<8x16xf32, #tpu.memory_space<vmem>>, %arg23: memref<8x64xf32, #tpu.memory_space<vmem>>, %arg24: memref<16x64xf32, #tpu.memory_space<vmem>>, %arg25: memref<8x16x64xf32, #tpu.memory_space<vmem>>, %arg26: memref<8x16x64xf32, #tpu.memory_space<vmem>>, %arg27: memref<8x16x64xf32, #tpu.memory_space<vmem>>) attributes {dimension_semantics = [#tpu.dimension_semantics<parallel>, #tpu.dimension_semantics<arbitrary>], iteration_bounds = array<i64: 2, 2>, scalar_prefetch = 0 : i64, scratch_operands = 10 : i64, tpu.core_type = #tpu.core_type<tc>, window_params = [{transform_indices = @transform_0, window_bounds = array<i64: 1, 8, 32>}, {pipeline_mode = #tpu.pipeline_mode<synchronous>, transform_indices = @transform_1, window_bounds = array<i64: 32, 64>}, {pipeline_mode = #tpu.pipeline_mode<synchronous>, transform_indices = @transform_2, window_bounds = array<i64: 1, 64>}, {pipeline_mode = #tpu.pipeline_mode<synchronous>, transform_indices = @transform_3, window_bounds = array<i64: 3, 64>}, {pipeline_mode = #tpu.pipeline_mode<synchronous>, transform_indices = @transform_4, window_bounds = array<i64: 1, 64>}, {pipeline_mode = #tpu.pipeline_mode<synchronous>, transform_indices = @transform_5, window_bounds = array<i64: 64, 384>}, {pipeline_mode = #tpu.pipeline_mode<synchronous>, transform_indices = @transform_6, window_bounds = array<i64: 2, 64>}, {pipeline_mode = #tpu.pipeline_mode<synchronous>, transform_indices = @transform_7, window_bounds = array<i64: 1, 64>}, {pipeline_mode = #tpu.pipeline_mode<synchronous>, transform_indices = @transform_8, window_bounds = array<i64: 1, 2>}, {pipeline_mode = #tpu.pipeline_mode<synchronous>, transform_indices = @transform_9, window_bounds = array<i64: 1, 16>}, {pipeline_mode = #tpu.pipeline_mode<synchronous>, transform_indices = @transform_10, window_bounds = array<i64: 1, 16>}, {pipeline_mode = #tpu.pipeline_mode<synchronous>, transform_indices = @transform_11, window_bounds = array<i64: 16, 64>}, {pipeline_mode = #tpu.pipeline_mode<synchronous>, transform_indices = @transform_12, window_bounds = array<i64: 1, 64>}, {pipeline_mode = #tpu.pipeline_mode<synchronous>, transform_indices = @transform_13, window_bounds = array<i64: 64, 32>}, {pipeline_mode = #tpu.pipeline_mode<synchronous>, transform_indices = @transform_14, window_bounds = array<i64: 1, 32>}, {transform_indices = @transform_15, window_bounds = array<i64: 1, 8, 32>}]} {
    %c0 = arith.constant 0 : index
    %c0_0 = arith.constant 0 : index
    %c0_1 = arith.constant 0 : index
    %0 = vector.load %arg2[%c0, %c0_0, %c0_1] : memref<1x8x32xf32, #tpu.memory_space<vmem>>, vector<1x8x32xf32>
    %1 = vector.shape_cast %0 : vector<1x8x32xf32> to vector<8x32xf32>
    %2 = arith.truncf %1 : vector<8x32xf32> to vector<8x32xbf16>
    %c0_2 = arith.constant 0 : index
    %c0_3 = arith.constant 0 : index
    %3 = vector.load %arg3[%c0_2, %c0_3] : memref<32x64xbf16, #tpu.memory_space<vmem>>, vector<32x64xbf16>
    %cst = arith.constant dense<0.000000e+00> : vector<8x64xf32>
    %4 = tpu.matmul %2, %3, %cst {dimension_numbers = #tpu.dot_dimension_numbers<[1], [0], [0], [1], [0, 0, 1, 1], [], []>} : vector<8x32xbf16>, vector<32x64xbf16>, vector<8x64xf32> -> vector<8x64xf32>
    %c0_4 = arith.constant 0 : index
    %c0_5 = arith.constant 0 : index
    %5 = vector.load %arg4[%c0_4, %c0_5] : memref<1x64xf32, #tpu.memory_space<vmem>>, vector<1x64xf32>
    %6 = vector.broadcast %5 : vector<1x64xf32> to vector<8x64xf32>
    %7 = arith.addf %4, %6 : vector<8x64xf32>
    %c0_i32 = arith.constant 0 : i32
    %8 = arith.cmpi eq, %arg1, %c0_i32 : i32
    %9 = arith.extui %8 : i1 to i32
    %c0_i32_6 = arith.constant 0 : i32
    %10 = arith.cmpi ne, %9, %c0_i32_6 : i32
    scf.if %10 {
      %cst_158 = arith.constant 0.000000e+00 : f32
      %230 = vector.broadcast %cst_158 : f32 to vector<8x64xf32>
      %c0_159 = arith.constant 0 : index
      %c0_160 = arith.constant 0 : index
      %231 = vector.load %arg18[%c0_159, %c0_160] : memref<16x64xf32, #tpu.memory_space<vmem>>, vector<8x64xf32>
      tpu.vector_store %arg18[%c0_159, %c0_160], %230 {strides = array<i32>} : memref<16x64xf32, #tpu.memory_space<vmem>>, vector<8x64xf32>,
      %cst_161 = arith.constant 0.000000e+00 : f32
      %232 = vector.broadcast %cst_161 : f32 to vector<16x64xf32>
      %c0_162 = arith.constant 0 : index
      %c0_163 = arith.constant 0 : index
      %233 = vector.load %arg24[%c0_162, %c0_163] : memref<16x64xf32, #tpu.memory_space<vmem>>, vector<16x64xf32>
      tpu.vector_store %arg24[%c0_162, %c0_163], %232 {strides = array<i32>} : memref<16x64xf32, #tpu.memory_space<vmem>>, vector<16x64xf32>,
    } else {
    }
    %c0_i32_7 = arith.constant 0 : i32
    %11 = arith.cmpi sgt, %arg1, %c0_i32_7 : i32
    %12 = arith.extui %11 : i1 to i32
    %c0_i32_8 = arith.constant 0 : i32
    %13 = arith.cmpi ne, %12, %c0_i32_8 : i32
    scf.if %13 {
      %c14 = arith.constant 14 : index
      %c0_158 = arith.constant 0 : index
      %230 = vector.load %arg18[%c14, %c0_158] : memref<16x64xf32, #tpu.memory_space<vmem>>, vector<2x64xf32>
      %c6_159 = arith.constant 6 : index
      %c0_160 = arith.constant 0 : index
      %231 = vector.load %arg18[%c6_159, %c0_160] : memref<16x64xf32, #tpu.memory_space<vmem>>, vector<2x64xf32>
      tpu.vector_store %arg18[%c6_159, %c0_160], %230 {strides = array<i32>} : memref<16x64xf32, #tpu.memory_space<vmem>>, vector<2x64xf32>,
    } else {
    }
    %c8 = arith.constant 8 : index
    %c0_9 = arith.constant 0 : index
    %14 = vector.load %arg18[%c8, %c0_9] : memref<16x64xf32, #tpu.memory_space<vmem>>, vector<8x64xf32>
    tpu.vector_store %arg18[%c8, %c0_9], %7 {strides = array<i32>} : memref<16x64xf32, #tpu.memory_space<vmem>>, vector<8x64xf32>,
    %c0_10 = arith.constant 0 : index
    %c0_11 = arith.constant 0 : index
    %15 = vector.load %arg6[%c0_10, %c0_11] : memref<1x64xf32, #tpu.memory_space<vmem>>, vector<1x64xf32>
    %c6 = arith.constant 6 : index
    %c0_12 = arith.constant 0 : index
    %16 = vector.load %arg18[%c6, %c0_12] : memref<16x64xf32, #tpu.memory_space<vmem>>, vector<8x64xf32>
    %c0_13 = arith.constant 0 : index
    %c0_14 = arith.constant 0 : index
    %17 = vector.load %arg5[%c0_13, %c0_14] : memref<3x64xf32, #tpu.memory_space<vmem>>, vector<1x64xf32>
    %18 = vector.broadcast %17 : vector<1x64xf32> to vector<8x64xf32>
    %19 = arith.mulf %16, %18 : vector<8x64xf32>
    %20 = vector.broadcast %15 : vector<1x64xf32> to vector<8x64xf32>
    %21 = arith.addf %20, %19 : vector<8x64xf32>
    %c7 = arith.constant 7 : index
    %c0_15 = arith.constant 0 : index
    %22 = vector.load %arg18[%c7, %c0_15] : memref<16x64xf32, #tpu.memory_space<vmem>>, vector<8x64xf32>
    %c1 = arith.constant 1 : index
    %c0_16 = arith.constant 0 : index
    %23 = vector.load %arg5[%c1, %c0_16] : memref<3x64xf32, #tpu.memory_space<vmem>>, vector<1x64xf32>
    %24 = vector.broadcast %23 : vector<1x64xf32> to vector<8x64xf32>
    %25 = arith.mulf %22, %24 : vector<8x64xf32>
    %26 = arith.addf %21, %25 : vector<8x64xf32>
    %c8_17 = arith.constant 8 : index
    %c0_18 = arith.constant 0 : index
    %27 = vector.load %arg18[%c8_17, %c0_18] : memref<16x64xf32, #tpu.memory_space<vmem>>, vector<8x64xf32>
    %c2 = arith.constant 2 : index
    %c0_19 = arith.constant 0 : index
    %28 = vector.load %arg5[%c2, %c0_19] : memref<3x64xf32, #tpu.memory_space<vmem>>, vector<1x64xf32>
    %29 = vector.broadcast %28 : vector<1x64xf32> to vector<8x64xf32>
    %30 = arith.mulf %27, %29 : vector<8x64xf32>
    %31 = arith.addf %26, %30 : vector<8x64xf32>
    %32 = arith.negf %31 : vector<8x64xf32>
    %33 = math.exp %32 : vector<8x64xf32>
    %cst_20 = arith.constant 1.000000e+00 : f32
    %34 = vector.broadcast %cst_20 : f32 to vector<8x64xf32>
    %35 = arith.addf %34, %33 : vector<8x64xf32>
    %36 = arith.divf %34, %35 : vector<8x64xf32>
    %37 = arith.mulf %31, %36 : vector<8x64xf32>
    %38 = arith.truncf %37 : vector<8x64xf32> to vector<8x64xbf16>
    %c0_21 = arith.constant 0 : index
    %c0_22 = arith.constant 0 : index
    %39 = vector.load %arg7[%c0_21, %c0_22] : memref<64x384xbf16, #tpu.memory_space<vmem>>, vector<64x384xbf16>
    %cst_23 = arith.constant dense<0.000000e+00> : vector<8x384xf32>
    %40 = tpu.matmul %38, %39, %cst_23 {dimension_numbers = #tpu.dot_dimension_numbers<[1], [0], [0], [1], [0, 0, 1, 1], [], []>} : vector<8x64xbf16>, vector<64x384xbf16>, vector<8x384xf32> -> vector<8x384xf32>
    %41 = vector.extract_strided_slice %40 {offsets = [0, 0], sizes = [8, 2], strides = [1, 1]} : vector<8x384xf32> to vector<8x2xf32>
    %c0_24 = arith.constant 0 : index
    %c0_25 = arith.constant 0 : index
    %42 = vector.load %arg10[%c0_24, %c0_25] : memref<1x2xf32, #tpu.memory_space<vmem>>, vector<1x2xf32>
    %43 = arith.mulf %41, %41 : vector<8x2xf32>
    %cst_26 = arith.constant dense<0.000000e+00> : vector<8xf32>
    %44 = vector.multi_reduction <add>, %43, %cst_26 [1] : vector<8x2xf32> to vector<8xf32>
    %45 = vector.shape_cast %44 : vector<8xf32> to vector<8x1xf32>
    %cst_27 = arith.constant 2.000000e+00 : f32
    %46 = vector.broadcast %cst_27 : f32 to vector<8x1xf32>
    %47 = arith.divf %45, %46 : vector<8x1xf32>
    %cst_28 = arith.constant 9.99999974E-6 : f32
    %48 = vector.broadcast %cst_28 : f32 to vector<8x1xf32>
    %49 = arith.addf %47, %48 : vector<8x1xf32>
    %50 = math.rsqrt %49 : vector<8x1xf32>
    %51 = vector.broadcast %50 : vector<8x1xf32> to vector<8x2xf32>
    %52 = arith.mulf %41, %51 : vector<8x2xf32>
    %53 = vector.broadcast %42 : vector<1x2xf32> to vector<8x2xf32>
    %54 = arith.mulf %52, %53 : vector<8x2xf32>
    %55 = vector.extract_strided_slice %40 {offsets = [0, 128], sizes = [8, 16], strides = [1, 1]} : vector<8x384xf32> to vector<8x16xf32>
    %c0_29 = arith.constant 0 : index
    %c0_30 = arith.constant 0 : index
    %56 = vector.load %arg11[%c0_29, %c0_30] : memref<1x16xf32, #tpu.memory_space<vmem>>, vector<1x16xf32>
    %57 = arith.mulf %55, %55 : vector<8x16xf32>
    %cst_31 = arith.constant dense<0.000000e+00> : vector<8xf32>
    %58 = vector.multi_reduction <add>, %57, %cst_31 [1] : vector<8x16xf32> to vector<8xf32>
    %59 = vector.shape_cast %58 : vector<8xf32> to vector<8x1xf32>
    %cst_32 = arith.constant 1.600000e+01 : f32
    %60 = vector.broadcast %cst_32 : f32 to vector<8x1xf32>
    %61 = arith.divf %59, %60 : vector<8x1xf32>
    %cst_33 = arith.constant 9.99999974E-6 : f32
    %62 = vector.broadcast %cst_33 : f32 to vector<8x1xf32>
    %63 = arith.addf %61, %62 : vector<8x1xf32>
    %64 = math.rsqrt %63 : vector<8x1xf32>
    %65 = vector.broadcast %64 : vector<8x1xf32> to vector<8x16xf32>
    %66 = arith.mulf %55, %65 : vector<8x16xf32>
    %67 = vector.broadcast %56 : vector<1x16xf32> to vector<8x16xf32>
    %68 = arith.mulf %66, %67 : vector<8x16xf32>
    %69 = vector.extract_strided_slice %40 {offsets = [0, 256], sizes = [8, 16], strides = [1, 1]} : vector<8x384xf32> to vector<8x16xf32>
    %c0_34 = arith.constant 0 : index
    %c0_35 = arith.constant 0 : index
    %70 = vector.load %arg12[%c0_34, %c0_35] : memref<1x16xf32, #tpu.memory_space<vmem>>, vector<1x16xf32>
    %71 = arith.mulf %69, %69 : vector<8x16xf32>
    %cst_36 = arith.constant dense<0.000000e+00> : vector<8xf32>
    %72 = vector.multi_reduction <add>, %71, %cst_36 [1] : vector<8x16xf32> to vector<8xf32>
    %73 = vector.shape_cast %72 : vector<8xf32> to vector<8x1xf32>
    %cst_37 = arith.constant 1.600000e+01 : f32
    %74 = vector.broadcast %cst_37 : f32 to vector<8x1xf32>
    %75 = arith.divf %73, %74 : vector<8x1xf32>
    %cst_38 = arith.constant 9.99999974E-6 : f32
    %76 = vector.broadcast %cst_38 : f32 to vector<8x1xf32>
    %77 = arith.addf %75, %76 : vector<8x1xf32>
    %78 = math.rsqrt %77 : vector<8x1xf32>
    %79 = vector.broadcast %78 : vector<8x1xf32> to vector<8x16xf32>
    %80 = arith.mulf %69, %79 : vector<8x16xf32>
    %81 = vector.broadcast %70 : vector<1x16xf32> to vector<8x16xf32>
    %82 = arith.mulf %80, %81 : vector<8x16xf32>
    %83 = arith.truncf %54 : vector<8x2xf32> to vector<8x2xbf16>
    %c0_39 = arith.constant 0 : index
    %c0_40 = arith.constant 0 : index
    %84 = vector.load %arg8[%c0_39, %c0_40] : memref<2x64xbf16, #tpu.memory_space<vmem>>, vector<2x64xbf16>
    %cst_41 = arith.constant dense<0.000000e+00> : vector<8x64xf32>
    %85 = tpu.matmul %83, %84, %cst_41 {dimension_numbers = #tpu.dot_dimension_numbers<[1], [0], [0], [1], [0, 0, 1, 1], [], []>} : vector<8x2xbf16>, vector<2x64xbf16>, vector<8x64xf32> -> vector<8x64xf32>
    %c0_42 = arith.constant 0 : index
    %c0_43 = arith.constant 0 : index
    %86 = vector.load %arg9[%c0_42, %c0_43] : memref<1x64xf32, #tpu.memory_space<vmem>>, vector<1x64xf32>
    %87 = vector.broadcast %86 : vector<1x64xf32> to vector<8x64xf32>
    %88 = arith.addf %85, %87 : vector<8x64xf32>
    %cst_44 = arith.constant 0.000000e+00 : f32
    %89 = vector.broadcast %cst_44 : f32 to vector<8x64xf32>
    %90 = arith.maximumf %88, %89 : vector<8x64xf32>
    %91 = vector.broadcast %cst_44 : f32 to vector<8x64xf32>
    %92 = arith.subf %88, %91 : vector<8x64xf32>
    %93 = arith.cmpf one, %92, %92 : vector<8x64xf32>
    %94 = vector.broadcast %cst_44 : f32 to vector<8x64xf32>
    %95 = arith.addf %88, %94 : vector<8x64xf32>
    %96 = math.absf %92 : vector<8x64xf32>
    %cst_45 = arith.constant 0.000000e+00 : f32
    %97 = vector.broadcast %cst_45 : f32 to vector<8x64xf32>
    %98 = arith.subf %97, %96 : vector<8x64xf32>
    %99 = math.exp %98 : vector<8x64xf32>
    %100 = math.log1p %99 : vector<8x64xf32>
    %101 = arith.addf %90, %100 : vector<8x64xf32>
    %102 = arith.select %93, %95, %101 : vector<8x64xi1>, vector<8x64xf32>
    %c0_46 = arith.constant 0 : index
    %c0_47 = arith.constant 0 : index
    %103 = vector.load %arg19[%c0_46, %c0_47] : memref<8x64xf32, #tpu.memory_space<vmem>>, vector<8x64xf32>
    tpu.vector_store %arg19[%c0_46, %c0_47], %37 {strides = array<i32>} : memref<8x64xf32, #tpu.memory_space<vmem>>, vector<8x64xf32>,
    %c0_48 = arith.constant 0 : index
    %c0_49 = arith.constant 0 : index
    %104 = vector.load %arg20[%c0_48, %c0_49] : memref<8x64xf32, #tpu.memory_space<vmem>>, vector<8x64xf32>
    tpu.vector_store %arg20[%c0_48, %c0_49], %102 {strides = array<i32>} : memref<8x64xf32, #tpu.memory_space<vmem>>, vector<8x64xf32>,
    %c0_50 = arith.constant 0 : index
    %c0_51 = arith.constant 0 : index
    %105 = vector.load %arg21[%c0_50, %c0_51] : memref<8x16xf32, #tpu.memory_space<vmem>>, vector<8x16xf32>
    tpu.vector_store %arg21[%c0_50, %c0_51], %68 {strides = array<i32>} : memref<8x16xf32, #tpu.memory_space<vmem>>, vector<8x16xf32>,
    %c0_52 = arith.constant 0 : index
    %c0_53 = arith.constant 0 : index
    %106 = vector.load %arg22[%c0_52, %c0_53] : memref<8x16xf32, #tpu.memory_space<vmem>>, vector<8x16xf32>
    tpu.vector_store %arg22[%c0_52, %c0_53], %82 {strides = array<i32>} : memref<8x16xf32, #tpu.memory_space<vmem>>, vector<8x16xf32>,
    %c0_54 = arith.constant 0 : index
    %c0_55 = arith.constant 0 : index
    %107 = vector.load %arg13[%c0_54, %c0_55] : memref<16x64xf32, #tpu.memory_space<vmem>>, vector<16x64xf32>
    %108 = math.exp %107 : vector<16x64xf32>
    %cst_56 = arith.constant 0.000000e+00 : f32
    %109 = vector.broadcast %cst_56 : f32 to vector<16x64xf32>
    %110 = arith.subf %109, %108 : vector<16x64xf32>
    %c0_57 = arith.constant 0 : index
    %c0_58 = arith.constant 0 : index
    %111 = vector.load %arg14[%c0_57, %c0_58] : memref<1x64xf32, #tpu.memory_space<vmem>>, vector<1x64xf32>
    %c0_59 = arith.constant 0 : index
    %c0_60 = arith.constant 0 : index
    %112 = vector.load %arg24[%c0_59, %c0_60] : memref<16x64xf32, #tpu.memory_space<vmem>>, vector<16x64xf32>
    %c0_i32_61 = arith.constant 0 : i32
    %c8_i32 = arith.constant 8 : i32
    %113 = arith.muli %c0_i32_61, %c8_i32 : i32
    %114 = tpu.assume_multiple %113, 8 : i32
    %115 = arith.index_cast %114 : i32 to index
    %c0_62 = arith.constant 0 : index
    %116 = vector.load %arg19[%115, %c0_62] : memref<8x64xf32, #tpu.memory_space<vmem>>, vector<8x64xf32>
    %117 = arith.index_cast %114 : i32 to index
    %c0_63 = arith.constant 0 : index
    %118 = vector.load %arg20[%117, %c0_63] : memref<8x64xf32, #tpu.memory_space<vmem>>, vector<8x64xf32>
    %119 = arith.index_cast %114 : i32 to index
    %c0_64 = arith.constant 0 : index
    %120 = vector.load %arg21[%119, %c0_64] : memref<8x16xf32, #tpu.memory_space<vmem>>, vector<8x16xf32>
    %121 = arith.index_cast %114 : i32 to index
    %c0_65 = arith.constant 0 : index
    %122 = vector.load %arg22[%121, %c0_65] : memref<8x16xf32, #tpu.memory_space<vmem>>, vector<8x16xf32>
    %123 = vector.shape_cast %118 : vector<8x64xf32> to vector<8x1x64xf32>
    %124 = vector.shape_cast %110 : vector<16x64xf32> to vector<1x16x64xf32>
    %125 = vector.broadcast %123 : vector<8x1x64xf32> to vector<8x16x64xf32>
    %126 = vector.broadcast %124 : vector<1x16x64xf32> to vector<8x16x64xf32>
    %127 = arith.mulf %125, %126 : vector<8x16x64xf32>
    %128 = math.exp %127 : vector<8x16x64xf32>
    %c0_66 = arith.constant 0 : index
    %c0_67 = arith.constant 0 : index
    %c0_68 = arith.constant 0 : index
    %129 = vector.load %arg25[%c0_66, %c0_67, %c0_68] : memref<8x16x64xf32, #tpu.memory_space<vmem>>, vector<8x16x64xf32>
    tpu.vector_store %arg25[%c0_66, %c0_67, %c0_68], %128 {strides = array<i32>} : memref<8x16x64xf32, #tpu.memory_space<vmem>>, vector<8x16x64xf32>,
    %130 = vector.shape_cast %120 : vector<8x16xf32> to vector<8x16x1xf32>
    %131 = arith.mulf %118, %116 : vector<8x64xf32>
    %132 = vector.shape_cast %131 : vector<8x64xf32> to vector<8x1x64xf32>
    %133 = vector.broadcast %130 : vector<8x16x1xf32> to vector<8x16x64xf32>
    %134 = vector.broadcast %132 : vector<8x1x64xf32> to vector<8x16x64xf32>
    %135 = arith.mulf %133, %134 : vector<8x16x64xf32>
    %c0_69 = arith.constant 0 : index
    %c0_70 = arith.constant 0 : index
    %c0_71 = arith.constant 0 : index
    %136 = vector.load %arg26[%c0_69, %c0_70, %c0_71] : memref<8x16x64xf32, #tpu.memory_space<vmem>>, vector<8x16x64xf32>
    tpu.vector_store %arg26[%c0_69, %c0_70, %c0_71], %135 {strides = array<i32>} : memref<8x16x64xf32, #tpu.memory_space<vmem>>, vector<8x16x64xf32>,
    %c0_72 = arith.constant 0 : index
    %c0_73 = arith.constant 0 : index
    %c0_74 = arith.constant 0 : index
    %137 = vector.load %arg25[%c0_72, %c0_73, %c0_74] : memref<8x16x64xf32, #tpu.memory_space<vmem>>, vector<1x16x64xf32>
    %138 = vector.shape_cast %137 : vector<1x16x64xf32> to vector<16x64xf32>
    %139 = arith.mulf %138, %112 : vector<16x64xf32>
    %c0_75 = arith.constant 0 : index
    %c0_76 = arith.constant 0 : index
    %c0_77 = arith.constant 0 : index
    %140 = vector.load %arg26[%c0_75, %c0_76, %c0_77] : memref<8x16x64xf32, #tpu.memory_space<vmem>>, vector<1x16x64xf32>
    %141 = vector.shape_cast %140 : vector<1x16x64xf32> to vector<16x64xf32>
    %142 = arith.addf %139, %141 : vector<16x64xf32>
    %c0_78 = arith.constant 0 : index
    %c0_79 = arith.constant 0 : index
    %c0_80 = arith.constant 0 : index
    %143 = vector.load %arg27[%c0_78, %c0_79, %c0_80] : memref<8x16x64xf32, #tpu.memory_space<vmem>>, vector<1x16x64xf32>
    %144 = vector.shape_cast %143 : vector<1x16x64xf32> to vector<16x64xf32>
    %145 = vector.shape_cast %142 : vector<16x64xf32> to vector<1x16x64xf32>
    tpu.vector_store %arg27[%c0_78, %c0_79, %c0_80], %145 {strides = array<i32>} : memref<8x16x64xf32, #tpu.memory_space<vmem>>, vector<1x16x64xf32>,
    %c1_81 = arith.constant 1 : index
    %c0_82 = arith.constant 0 : index
    %c0_83 = arith.constant 0 : index
    %146 = vector.load %arg25[%c1_81, %c0_82, %c0_83] : memref<8x16x64xf32, #tpu.memory_space<vmem>>, vector<1x16x64xf32>
    %147 = vector.shape_cast %146 : vector<1x16x64xf32> to vector<16x64xf32>
    %148 = arith.mulf %147, %142 : vector<16x64xf32>
    %c1_84 = arith.constant 1 : index
    %c0_85 = arith.constant 0 : index
    %c0_86 = arith.constant 0 : index
    %149 = vector.load %arg26[%c1_84, %c0_85, %c0_86] : memref<8x16x64xf32, #tpu.memory_space<vmem>>, vector<1x16x64xf32>
    %150 = vector.shape_cast %149 : vector<1x16x64xf32> to vector<16x64xf32>
    %151 = arith.addf %148, %150 : vector<16x64xf32>
    %c1_87 = arith.constant 1 : index
    %c0_88 = arith.constant 0 : index
    %c0_89 = arith.constant 0 : index
    %152 = vector.load %arg27[%c1_87, %c0_88, %c0_89] : memref<8x16x64xf32, #tpu.memory_space<vmem>>, vector<1x16x64xf32>
    %153 = vector.shape_cast %152 : vector<1x16x64xf32> to vector<16x64xf32>
    %154 = vector.shape_cast %151 : vector<16x64xf32> to vector<1x16x64xf32>
    tpu.vector_store %arg27[%c1_87, %c0_88, %c0_89], %154 {strides = array<i32>} : memref<8x16x64xf32, #tpu.memory_space<vmem>>, vector<1x16x64xf32>,
    %c2_90 = arith.constant 2 : index
    %c0_91 = arith.constant 0 : index
    %c0_92 = arith.constant 0 : index
    %155 = vector.load %arg25[%c2_90, %c0_91, %c0_92] : memref<8x16x64xf32, #tpu.memory_space<vmem>>, vector<1x16x64xf32>
    %156 = vector.shape_cast %155 : vector<1x16x64xf32> to vector<16x64xf32>
    %157 = arith.mulf %156, %151 : vector<16x64xf32>
    %c2_93 = arith.constant 2 : index
    %c0_94 = arith.constant 0 : index
    %c0_95 = arith.constant 0 : index
    %158 = vector.load %arg26[%c2_93, %c0_94, %c0_95] : memref<8x16x64xf32, #tpu.memory_space<vmem>>, vector<1x16x64xf32>
    %159 = vector.shape_cast %158 : vector<1x16x64xf32> to vector<16x64xf32>
    %160 = arith.addf %157, %159 : vector<16x64xf32>
    %c2_96 = arith.constant 2 : index
    %c0_97 = arith.constant 0 : index
    %c0_98 = arith.constant 0 : index
    %161 = vector.load %arg27[%c2_96, %c0_97, %c0_98] : memref<8x16x64xf32, #tpu.memory_space<vmem>>, vector<1x16x64xf32>
    %162 = vector.shape_cast %161 : vector<1x16x64xf32> to vector<16x64xf32>
    %163 = vector.shape_cast %160 : vector<16x64xf32> to vector<1x16x64xf32>
    tpu.vector_store %arg27[%c2_96, %c0_97, %c0_98], %163 {strides = array<i32>} : memref<8x16x64xf32, #tpu.memory_space<vmem>>, vector<1x16x64xf32>,
    %c3 = arith.constant 3 : index
    %c0_99 = arith.constant 0 : index
    %c0_100 = arith.constant 0 : index
    %164 = vector.load %arg25[%c3, %c0_99, %c0_100] : memref<8x16x64xf32, #tpu.memory_space<vmem>>, vector<1x16x64xf32>
    %165 = vector.shape_cast %164 : vector<1x16x64xf32> to vector<16x64xf32>
    %166 = arith.mulf %165, %160 : vector<16x64xf32>
    %c3_101 = arith.constant 3 : index
    %c0_102 = arith.constant 0 : index
    %c0_103 = arith.constant 0 : index
    %167 = vector.load %arg26[%c3_101, %c0_102, %c0_103] : memref<8x16x64xf32, #tpu.memory_space<vmem>>, vector<1x16x64xf32>
    %168 = vector.shape_cast %167 : vector<1x16x64xf32> to vector<16x64xf32>
    %169 = arith.addf %166, %168 : vector<16x64xf32>
    %c3_104 = arith.constant 3 : index
    %c0_105 = arith.constant 0 : index
    %c0_106 = arith.constant 0 : index
    %170 = vector.load %arg27[%c3_104, %c0_105, %c0_106] : memref<8x16x64xf32, #tpu.memory_space<vmem>>, vector<1x16x64xf32>
    %171 = vector.shape_cast %170 : vector<1x16x64xf32> to vector<16x64xf32>
    %172 = vector.shape_cast %169 : vector<16x64xf32> to vector<1x16x64xf32>
    tpu.vector_store %arg27[%c3_104, %c0_105, %c0_106], %172 {strides = array<i32>} : memref<8x16x64xf32, #tpu.memory_space<vmem>>, vector<1x16x64xf32>,
    %c4 = arith.constant 4 : index
    %c0_107 = arith.constant 0 : index
    %c0_108 = arith.constant 0 : index
    %173 = vector.load %arg25[%c4, %c0_107, %c0_108] : memref<8x16x64xf32, #tpu.memory_space<vmem>>, vector<1x16x64xf32>
    %174 = vector.shape_cast %173 : vector<1x16x64xf32> to vector<16x64xf32>
    %175 = arith.mulf %174, %169 : vector<16x64xf32>
    %c4_109 = arith.constant 4 : index
    %c0_110 = arith.constant 0 : index
    %c0_111 = arith.constant 0 : index
    %176 = vector.load %arg26[%c4_109, %c0_110, %c0_111] : memref<8x16x64xf32, #tpu.memory_space<vmem>>, vector<1x16x64xf32>
    %177 = vector.shape_cast %176 : vector<1x16x64xf32> to vector<16x64xf32>
    %178 = arith.addf %175, %177 : vector<16x64xf32>
    %c4_112 = arith.constant 4 : index
    %c0_113 = arith.constant 0 : index
    %c0_114 = arith.constant 0 : index
    %179 = vector.load %arg27[%c4_112, %c0_113, %c0_114] : memref<8x16x64xf32, #tpu.memory_space<vmem>>, vector<1x16x64xf32>
    %180 = vector.shape_cast %179 : vector<1x16x64xf32> to vector<16x64xf32>
    %181 = vector.shape_cast %178 : vector<16x64xf32> to vector<1x16x64xf32>
    tpu.vector_store %arg27[%c4_112, %c0_113, %c0_114], %181 {strides = array<i32>} : memref<8x16x64xf32, #tpu.memory_space<vmem>>, vector<1x16x64xf32>,
    %c5 = arith.constant 5 : index
    %c0_115 = arith.constant 0 : index
    %c0_116 = arith.constant 0 : index
    %182 = vector.load %arg25[%c5, %c0_115, %c0_116] : memref<8x16x64xf32, #tpu.memory_space<vmem>>, vector<1x16x64xf32>
    %183 = vector.shape_cast %182 : vector<1x16x64xf32> to vector<16x64xf32>
    %184 = arith.mulf %183, %178 : vector<16x64xf32>
    %c5_117 = arith.constant 5 : index
    %c0_118 = arith.constant 0 : index
    %c0_119 = arith.constant 0 : index
    %185 = vector.load %arg26[%c5_117, %c0_118, %c0_119] : memref<8x16x64xf32, #tpu.memory_space<vmem>>, vector<1x16x64xf32>
    %186 = vector.shape_cast %185 : vector<1x16x64xf32> to vector<16x64xf32>
    %187 = arith.addf %184, %186 : vector<16x64xf32>
    %c5_120 = arith.constant 5 : index
    %c0_121 = arith.constant 0 : index
    %c0_122 = arith.constant 0 : index
    %188 = vector.load %arg27[%c5_120, %c0_121, %c0_122] : memref<8x16x64xf32, #tpu.memory_space<vmem>>, vector<1x16x64xf32>
    %189 = vector.shape_cast %188 : vector<1x16x64xf32> to vector<16x64xf32>
    %190 = vector.shape_cast %187 : vector<16x64xf32> to vector<1x16x64xf32>
    tpu.vector_store %arg27[%c5_120, %c0_121, %c0_122], %190 {strides = array<i32>} : memref<8x16x64xf32, #tpu.memory_space<vmem>>, vector<1x16x64xf32>,
    %c6_123 = arith.constant 6 : index
    %c0_124 = arith.constant 0 : index
    %c0_125 = arith.constant 0 : index
    %191 = vector.load %arg25[%c6_123, %c0_124, %c0_125] : memref<8x16x64xf32, #tpu.memory_space<vmem>>, vector<1x16x64xf32>
    %192 = vector.shape_cast %191 : vector<1x16x64xf32> to vector<16x64xf32>
    %193 = arith.mulf %192, %187 : vector<16x64xf32>
    %c6_126 = arith.constant 6 : index
    %c0_127 = arith.constant 0 : index
    %c0_128 = arith.constant 0 : index
    %194 = vector.load %arg26[%c6_126, %c0_127, %c0_128] : memref<8x16x64xf32, #tpu.memory_space<vmem>>, vector<1x16x64xf32>
    %195 = vector.shape_cast %194 : vector<1x16x64xf32> to vector<16x64xf32>
    %196 = arith.addf %193, %195 : vector<16x64xf32>
    %c6_129 = arith.constant 6 : index
    %c0_130 = arith.constant 0 : index
    %c0_131 = arith.constant 0 : index
    %197 = vector.load %arg27[%c6_129, %c0_130, %c0_131] : memref<8x16x64xf32, #tpu.memory_space<vmem>>, vector<1x16x64xf32>
    %198 = vector.shape_cast %197 : vector<1x16x64xf32> to vector<16x64xf32>
    %199 = vector.shape_cast %196 : vector<16x64xf32> to vector<1x16x64xf32>
    tpu.vector_store %arg27[%c6_129, %c0_130, %c0_131], %199 {strides = array<i32>} : memref<8x16x64xf32, #tpu.memory_space<vmem>>, vector<1x16x64xf32>,
    %c7_132 = arith.constant 7 : index
    %c0_133 = arith.constant 0 : index
    %c0_134 = arith.constant 0 : index
    %200 = vector.load %arg25[%c7_132, %c0_133, %c0_134] : memref<8x16x64xf32, #tpu.memory_space<vmem>>, vector<1x16x64xf32>
    %201 = vector.shape_cast %200 : vector<1x16x64xf32> to vector<16x64xf32>
    %202 = arith.mulf %201, %196 : vector<16x64xf32>
    %c7_135 = arith.constant 7 : index
    %c0_136 = arith.constant 0 : index
    %c0_137 = arith.constant 0 : index
    %203 = vector.load %arg26[%c7_135, %c0_136, %c0_137] : memref<8x16x64xf32, #tpu.memory_space<vmem>>, vector<1x16x64xf32>
    %204 = vector.shape_cast %203 : vector<1x16x64xf32> to vector<16x64xf32>
    %205 = arith.addf %202, %204 : vector<16x64xf32>
    %c7_138 = arith.constant 7 : index
    %c0_139 = arith.constant 0 : index
    %c0_140 = arith.constant 0 : index
    %206 = vector.load %arg27[%c7_138, %c0_139, %c0_140] : memref<8x16x64xf32, #tpu.memory_space<vmem>>, vector<1x16x64xf32>
    %207 = vector.shape_cast %206 : vector<1x16x64xf32> to vector<16x64xf32>
    %208 = vector.shape_cast %205 : vector<16x64xf32> to vector<1x16x64xf32>
    tpu.vector_store %arg27[%c7_138, %c0_139, %c0_140], %208 {strides = array<i32>} : memref<8x16x64xf32, #tpu.memory_space<vmem>>, vector<1x16x64xf32>,
    %209 = vector.shape_cast %122 : vector<8x16xf32> to vector<8x16x1xf32>
    %c0_141 = arith.constant 0 : index
    %c0_142 = arith.constant 0 : index
    %c0_143 = arith.constant 0 : index
    %210 = vector.load %arg27[%c0_141, %c0_142, %c0_143] : memref<8x16x64xf32, #tpu.memory_space<vmem>>, vector<8x16x64xf32>
    %211 = vector.broadcast %209 : vector<8x16x1xf32> to vector<8x16x64xf32>
    %212 = arith.mulf %211, %210 : vector<8x16x64xf32>
    %cst_144 = arith.constant dense<0.000000e+00> : vector<8x64xf32>
    %213 = vector.multi_reduction <add>, %212, %cst_144 [1] : vector<8x16x64xf32> to vector<8x64xf32>
    %214 = vector.broadcast %111 : vector<1x64xf32> to vector<8x64xf32>
    %215 = arith.mulf %214, %116 : vector<8x64xf32>
    %216 = arith.addf %213, %215 : vector<8x64xf32>
    %217 = arith.index_cast %114 : i32 to index
    %c0_145 = arith.constant 0 : index
    %218 = vector.load %arg23[%217, %c0_145] : memref<8x64xf32, #tpu.memory_space<vmem>>, vector<8x64xf32>
    tpu.vector_store %arg23[%217, %c0_145], %216 {strides = array<i32>} : memref<8x64xf32, #tpu.memory_space<vmem>>, vector<8x64xf32>,
    %c1_i32 = arith.constant 1 : i32
    %c0_146 = arith.constant 0 : index
    %c0_147 = arith.constant 0 : index
    %219 = vector.load %arg24[%c0_146, %c0_147] : memref<16x64xf32, #tpu.memory_space<vmem>>, vector<16x64xf32>
    tpu.vector_store %arg24[%c0_146, %c0_147], %205 {strides = array<i32>} : memref<16x64xf32, #tpu.memory_space<vmem>>, vector<16x64xf32>,
    %c0_148 = arith.constant 0 : index
    %c0_149 = arith.constant 0 : index
    %220 = vector.load %arg23[%c0_148, %c0_149] : memref<8x64xf32, #tpu.memory_space<vmem>>, vector<8x64xf32>
    %221 = arith.truncf %220 : vector<8x64xf32> to vector<8x64xbf16>
    %c0_150 = arith.constant 0 : index
    %c0_151 = arith.constant 0 : index
    %222 = vector.load %arg15[%c0_150, %c0_151] : memref<64x32xbf16, #tpu.memory_space<vmem>>, vector<64x32xbf16>
    %cst_152 = arith.constant dense<0.000000e+00> : vector<8x32xf32>
    %223 = tpu.matmul %221, %222, %cst_152 {dimension_numbers = #tpu.dot_dimension_numbers<[1], [0], [0], [1], [0, 0, 1, 1], [], []>} : vector<8x64xbf16>, vector<64x32xbf16>, vector<8x32xf32> -> vector<8x32xf32>
    %c0_153 = arith.constant 0 : index
    %c0_154 = arith.constant 0 : index
    %224 = vector.load %arg16[%c0_153, %c0_154] : memref<1x32xf32, #tpu.memory_space<vmem>>, vector<1x32xf32>
    %225 = vector.broadcast %224 : vector<1x32xf32> to vector<8x32xf32>
    %226 = arith.addf %223, %225 : vector<8x32xf32>
    %c0_155 = arith.constant 0 : index
    %c0_156 = arith.constant 0 : index
    %c0_157 = arith.constant 0 : index
    %227 = vector.load %arg17[%c0_155, %c0_156, %c0_157] : memref<1x8x32xf32, #tpu.memory_space<vmem>>, vector<1x8x32xf32>
    %228 = vector.shape_cast %227 : vector<1x8x32xf32> to vector<8x32xf32>
    %229 = vector.shape_cast %226 : vector<8x32xf32> to vector<1x8x32xf32>
    tpu.vector_store %arg17[%c0_155, %c0_156, %c0_157], %229 {strides = array<i32>} : memref<1x8x32xf32, #tpu.memory_space<vmem>>, vector<1x8x32xf32>,
    return
  }
  func.func @transform_0(%arg0: i32, %arg1: i32) -> (i32, i32, i32) {
    %c0_i32 = arith.constant 0 : i32
    %c0_i32_0 = arith.constant 0 : i32
    return %arg0, %arg1, %c0_i32 : i32, i32, i32
  }
  func.func @transform_1(%arg0: i32, %arg1: i32) -> (i32, i32) {
    %c0_i32 = arith.constant 0 : i32
    %c0_i32_0 = arith.constant 0 : i32
    %c0_i32_1 = arith.constant 0 : i32
    return %c0_i32, %c0_i32_0 : i32, i32
  }
  func.func @transform_2(%arg0: i32, %arg1: i32) -> (i32, i32) {
    %c0_i32 = arith.constant 0 : i32
    %c0_i32_0 = arith.constant 0 : i32
    %c0_i32_1 = arith.constant 0 : i32
    return %c0_i32, %c0_i32_0 : i32, i32
  }
  func.func @transform_3(%arg0: i32, %arg1: i32) -> (i32, i32) {
    %c0_i32 = arith.constant 0 : i32
    %c0_i32_0 = arith.constant 0 : i32
    %c0_i32_1 = arith.constant 0 : i32
    return %c0_i32, %c0_i32_0 : i32, i32
  }
  func.func @transform_4(%arg0: i32, %arg1: i32) -> (i32, i32) {
    %c0_i32 = arith.constant 0 : i32
    %c0_i32_0 = arith.constant 0 : i32
    %c0_i32_1 = arith.constant 0 : i32
    return %c0_i32, %c0_i32_0 : i32, i32
  }
  func.func @transform_5(%arg0: i32, %arg1: i32) -> (i32, i32) {
    %c0_i32 = arith.constant 0 : i32
    %c0_i32_0 = arith.constant 0 : i32
    %c0_i32_1 = arith.constant 0 : i32
    return %c0_i32, %c0_i32_0 : i32, i32
  }
  func.func @transform_6(%arg0: i32, %arg1: i32) -> (i32, i32) {
    %c0_i32 = arith.constant 0 : i32
    %c0_i32_0 = arith.constant 0 : i32
    %c0_i32_1 = arith.constant 0 : i32
    return %c0_i32, %c0_i32_0 : i32, i32
  }
  func.func @transform_7(%arg0: i32, %arg1: i32) -> (i32, i32) {
    %c0_i32 = arith.constant 0 : i32
    %c0_i32_0 = arith.constant 0 : i32
    %c0_i32_1 = arith.constant 0 : i32
    return %c0_i32, %c0_i32_0 : i32, i32
  }
  func.func @transform_8(%arg0: i32, %arg1: i32) -> (i32, i32) {
    %c0_i32 = arith.constant 0 : i32
    %c0_i32_0 = arith.constant 0 : i32
    %c0_i32_1 = arith.constant 0 : i32
    return %c0_i32, %c0_i32_0 : i32, i32
  }
  func.func @transform_9(%arg0: i32, %arg1: i32) -> (i32, i32) {
    %c0_i32 = arith.constant 0 : i32
    %c0_i32_0 = arith.constant 0 : i32
    %c0_i32_1 = arith.constant 0 : i32
    return %c0_i32, %c0_i32_0 : i32, i32
  }
  func.func @transform_10(%arg0: i32, %arg1: i32) -> (i32, i32) {
    %c0_i32 = arith.constant 0 : i32
    %c0_i32_0 = arith.constant 0 : i32
    %c0_i32_1 = arith.constant 0 : i32
    return %c0_i32, %c0_i32_0 : i32, i32
  }
  func.func @transform_11(%arg0: i32, %arg1: i32) -> (i32, i32) {
    %c0_i32 = arith.constant 0 : i32
    %c0_i32_0 = arith.constant 0 : i32
    %c0_i32_1 = arith.constant 0 : i32
    return %c0_i32, %c0_i32_0 : i32, i32
  }
  func.func @transform_12(%arg0: i32, %arg1: i32) -> (i32, i32) {
    %c0_i32 = arith.constant 0 : i32
    %c0_i32_0 = arith.constant 0 : i32
    %c0_i32_1 = arith.constant 0 : i32
    return %c0_i32, %c0_i32_0 : i32, i32
  }
  func.func @transform_13(%arg0: i32, %arg1: i32) -> (i32, i32) {
    %c0_i32 = arith.constant 0 : i32
    %c0_i32_0 = arith.constant 0 : i32
    %c0_i32_1 = arith.constant 0 : i32
    return %c0_i32, %c0_i32_0 : i32, i32
  }
  func.func @transform_14(%arg0: i32, %arg1: i32) -> (i32, i32) {
    %c0_i32 = arith.constant 0 : i32
    %c0_i32_0 = arith.constant 0 : i32
    %c0_i32_1 = arith.constant 0 : i32
    return %c0_i32, %c0_i32_0 : i32, i32
  }
  func.func @transform_15(%arg0: i32, %arg1: i32) -> (i32, i32, i32) {
    %c0_i32 = arith.constant 0 : i32
    %c0_i32_0 = arith.constant 0 : i32
    return %arg0, %arg1, %c0_i32 : i32, i32, i32
  }
}

</mosaic_0001>

<bundles_post_ra>
// kernel: tpu_custom_call.1
= control target key start
LH: loop header
LB: loop body
LE: loop exit
PB: predicated region body
PF: predicated region fallthrough
CT: control target
= control target key end

     0   :  { %s3289_s0 = inlined_call_operand.vmem [shape: f32[2,16,32], index: 0, kind: input, shape index: {}]   ;;  %s3290_s1 = inlined_call_operand.vmem [shape: bf16[32,64], index: 1, kind: input, shape index: {}]   ;;  %s3291_s2 = inlined_call_operand.hbm [shape: f32[1,64], index: 2, kind: input, shape index: {}]   ;;  %s3292_s3 = inlined_call_operand.hbm [shape: f32[3,64], index: 3, kind: input, shape index: {}]   ;;  %s3293_s4 = inlined_call_operand.hbm [shape: f32[1,64], index: 4, kind: input, shape index: {}]   ;;  %s3294_s5 = inlined_call_operand.hbm [shape: bf16[64,384], index: 5, kind: input, shape index: {}]   ;;  %s3295_s6 = inlined_call_operand.hbm [shape: bf16[2,64], index: 6, kind: input, shape index: {}]   ;;  %s3296_s7 = inlined_call_operand.hbm [shape: f32[1,64], index: 7, kind: input, shape index: {}]   ;;  %s3297_s8 = inlined_call_operand.hbm [shape: f32[1,2], index: 8, kind: input, shape index: {}]   ;;  %s3298_s9 = inlined_call_operand.hbm [shape: f32[1,16], index: 9, kind: input, shape index: {}]   ;;  %s3299_s10 = inlined_call_operand.vmem [shape: f32[1,16], index: 10, kind: input, shape index: {}]   ;;  %s3300_s11 = inlined_call_operand.vmem [shape: f32[16,64], index: 11, kind: input, shape index: {}]   ;;  %s3301_s12 = inlined_call_operand.vmem [shape: f32[1,64], index: 12, kind: input, shape index: {}]   ;;  %s3302_s13 = inlined_call_operand.vmem [shape: bf16[64,32], index: 13, kind: input, shape index: {}]   ;;  %s3303_s14 = inlined_call_operand.vmem [shape: f32[1,32], index: 14, kind: input, shape index: {}]   ;;  %s3304_s15 = inlined_call_operand.hbm [shape: f32[2,16,32], index: 15, kind: output, shape index: {}]  }
   0x1   :  { %3319 = sst [smem:[#allocation42_spill]] %s3292_s3 }
   0x2   :  { %3320 = sst [smem:[#allocation43_spill]] %s3301_s12 }
   0x3   :  { %3321 = sst [smem:[#allocation44_spill]] %s3303_s14 }
   0x4   :  { %3322 = sst [smem:[#allocation45_spill]] %s3304_s15 }
   0x5   :  { %20 = vsyncpa [#allocation13], 0 }
   0x6   :  { %21 = vsyncpa [#allocation16], 0 }
   0x7   :  { %22 = vsyncpa [#allocation19], 0 }
   0x8   :  { %23 = vsyncpa [#allocation22], 0 }
   0x9   :  { %24 = vsyncpa [#allocation25], 0 }
   0xa   :  { %25 = vsyncpa [#allocation14], 0 }
   0xb   :  { %27 = vsyncpa [#allocation14 + $0x1], 0  ;;  %s2805_s18 = smov 0   ;;  %s2807_s19 = smov 0  }
   0xc   :  { %s2809_s20 = smov 0   ;;  %s2811_s21 = smov 0  }
   0xd   :  { %s2813_s22 = smov 0   ;;  %s2815_s23 = smov 0  }
   0xe   :  { %s2817_s24 = smov 0   ;;  %s2819_s25 = smov 0  }
   0xf LB: > { %3323 = sst [smem:[#allocation33_spill]] %s2679_s18  ;;  %s2036_s26 = sadd.s32 4294967295, %s2707_s25   ;;  %s2707_s25 = sphi %s2819_s25, %s33_s25   ;;  %s2703_s24 = sphi %s2817_s24, %s3354_s24   ;;  %s2699_s23 = sphi %s2815_s23, %s3353_s23   ;;  %s2695_s22 = sphi %s2813_s22, %s3352_s22   ;;  %s2691_s21 = sphi %s2811_s21, %s3351_s21   ;;  %s2687_s20 = sphi %s2809_s20, %s3350_s20   ;;  %s2683_s19 = sphi %s2807_s19, %s3356_s19   ;;  %s2679_s18 = sphi %s2805_s18, %s3355_s18  }
  0x10   : > { %3324 = sst [smem:[#allocation34_spill]] %s2687_s20  ;;  %s2037_s27 = sadd.s32 4294967294, %s2707_s25  }
  0x11   : > { %3325 = sst [smem:[#allocation35_spill]] %s2699_s23  ;;  %s42_s28 = sadd.s32 1, %s2699_s23 }
  0x12   : > { %3326 = sst [smem:[#allocation36_spill]] %s2703_s24  ;;  %s45_s29 = sadd.s32 1, %s2703_s24 }
  0x13   : > { %3327 = sst [smem:[#allocation37_spill]] %s2707_s25  ;;  %p43_p0 = scmp.ge.s32.totalorder %s42_s28, 2 }
  0x14   : > { %s376_s30 = sadd.s32 1, %s2687_s20  ;;  %p386_p1 = scmp.ne.s32.totalorder %s2687_s20, %s2683_s19 }
  0x15   : > { %p387_p2 = scmp.eq.s32.totalorder %s2036_s26, 3  ;;  %s3358_s28 = smov (%p43_p0, %s42_s28), 0 }
  0x16   : > { %3328 = sst [smem:[#allocation38_spill]] %s3358_s28  ;;  %s3360_s29 = smov (!%p43_p0, %s45_s29), %s2703_s24 }
  0x17   : > { %s372_s16 = ssub.s32 %s2699_s23, %s3358_s28  ;;  %p2857_p3 = por %p387_p2, %p386_p1 }
  0x18   : > { %p47_p4 = scmp.ge.s32.totalorder %s3360_s29, 2  ;;  %p392_p5 = scmp.ne.s32.totalorder %s2683_s19, %s2679_s18 }
  0x19   : > { %s3329_s17 = scalar_select %p2857_p3, 1, 0 }
  0x1a   : > { %p393_p6 = scmp.eq.s32.totalorder %s2037_s27, 3  ;;  %p2038_p7 = scmp.ge.s32.totalorder %s2707_s25, 1 }
  0x1b   : > { %s3362_s29 = smov (%p47_p4, %s3360_s29), 0  ;;  %p400_p9 = scmp.lt.s32.totalorder %s2707_s25, 5 }
  0x1c   : > { %3330 = sst [smem:[#allocation39_spill]] %s3362_s29  ;;  %p2866_p8 = por %p393_p6, %p392_p5 }
  0x1d   : > { %s371_s14 = ssub.s32 %s2703_s24, %s3362_s29  ;;  %p2873_p10 = pnand %p2038_p7, %p400_p9 }
  0x1e   : > { %s3331_s15 = scalar_select %p2866_p8, 1, 0 }
  0x1f   : > { %s373_s12 = sor.u32 %s372_s16, %s371_s14  ;;  %p2877_p12 = scmp.eq.s32.totalorder %s2036_s26, 0 }
  0x20   : > { %3332 = sst [smem:[#allocation40_spill]] %s3331_s15  ;;  %p374_p11 = scmp.eq.s32.totalorder %s373_s12, 0 }
  0x21   : > { %s3333_s28 = scalar_select %p2873_p10, 1, 0 }
  0x22   : > { %s3334_s23 = scalar_select %p2877_p12, 1, 0 }
  0x23   : > { %p2189_p13 = pneg %p2873_p10  ;;  %s2709_s14 = smov [#allocation15]  }
  0x24   : > { %s2884_s27 = scalar_select %p374_p11, %s2687_s20, %s376_s30  }
  0x25   : > { %p2888_p0 = pnand %p2877_p12, %p2189_p13  ;;  %s427_s16 = sshll.u32 %s2709_s14, 4  ;;  %s428_s16 = int_to_ptr.vmem [resolvable:$true] %s427_s16 }
  0x26   : > { %3335 = sst [smem:[#allocation41_spill]] %s2884_s27  ;;  %s2710_s29 = smov [#allocation18]  }
  0x27   : > { %s448_s12 = sshll.u32 %s2710_s29, 4  ;;  %p2894_p1 = pneg %p2888_p0  ;;  %s449_s12 = int_to_ptr.vmem [resolvable:$true] %s448_s12 }
  0x28   : > { %s2398_s24 = scalar_lea.vmem %s428_s16, 64  ;;  %p2406_p6 = scmp.lt.s32.totalorder %s428_s16, %s428_s16 }
  0x29   : > { %p2399_p2 = scmp.ne.s32.totalorder %s428_s16, %s2398_s24  ;;  %p2407_p7 = scmp.lt.s32.totalorder %s2398_s24, %s2398_s24 }
  0x2b   : > { %p2401_p4 = pnand %p2399_p2, %p2894_p1  ;;  %p2408_p9 = por %p2407_p7, %p2406_p6 }
  0x2d   : > { %p2402_p5 = pneg %p2401_p4 }
  0x2f   : > { %p2409_p11 = pnand %p2408_p9, %p2402_p5 }
  0x31   : > { %2412 = shalt.err (!%p2409_p11)
}
  0x32   : > { %s3338_s3 = sld [smem:[#allocation42_spill]]  ;;  %s2424_s14 = scalar_lea.vmem %s449_s12, 1536 }
  0x33   : > { %p2425_p13 = scmp.ne.s32.totalorder %s449_s12, %s2424_s14  ;;  %p2432_p2 = scmp.lt.s32.totalorder %s449_s12, %s449_s12 }
  0x34   : > { %p2433_p4 = scmp.lt.s32.totalorder %s2424_s14, %s2424_s14 }
  0x35   : > { %p2427_p8 = pnand %p2425_p13, %p2894_p1 }
  0x36   : > { %p2434_p12 = por %p2433_p4, %p2432_p2 }
  0x37   : > { %p2428_p3 = pneg %p2427_p8 }
  0x38   : > { %2195 = dma.hbm_to_vmem [thread:$0]  (!%p2888_p0), %s3338_s3, 64, %s428_s16, [#allocation16]  }
  0x39   : > { %p2435_p10 = pnand %p2434_p12, %p2428_p3 }
  0x3b   : > { %2438 = shalt.err (!%p2435_p10)
}
  0x3c   : > { %s2711_s24 = smov 192   ;;  %s2712_s27 = smov 12  }
  0x3d   : > { %2201 = dma.hbm_to_vmem [thread:$0]  (!%p2888_p0), %s3294_s5, 1536, %s449_s12, [#allocation19], %s2711_s24, %s2711_s24, %s2712_s27  }
  0x3e   : > { %s2713_s16 = smov [#allocation21]  }
  0x3f   : > { %s473_s29 = sshll.u32 %s2713_s16, 4  ;;  %s474_s29 = int_to_ptr.vmem [resolvable:$true] %s473_s29 }
  0x40   : > { %s2450_s3 = scalar_lea.vmem %s474_s29, 16  ;;  %s2457_s14 = scalar_lea.vmem %s474_s29, 32 }
  0x41   : > { %p2451_p5 = scmp.ne.s32.totalorder %s474_s29, %s2450_s3  ;;  %p2458_p3 = scmp.lt.s32.totalorder %s474_s29, %s474_s29 }
  0x42   : > { %p2459_p10 = scmp.lt.s32.totalorder %s2457_s14, %s2450_s3 }
  0x43   : > { %p2453_p8 = pnand %p2451_p5, %p2894_p1 }
  0x44   : > { %p2460_p12 = por %p2459_p10, %p2458_p3 }
  0x45   : > { %p2454_p6 = pneg %p2453_p8 }
  0x47   : > { %p2461_p7 = pnand %p2460_p12, %p2454_p6 }
  0x49   : > { %2464 = shalt.err (!%p2461_p7)
}
  0x4a   : > { %2207 = dma.hbm_to_vmem [thread:$0]  (!%p2888_p0), %s3296_s7, 16, %s474_s29, [#allocation22]  }
  0x4b   : > { %s2714_s20 = smov [#allocation12]   ;;  %s2715_s12 = smov [#allocation17]  }
  0x4c   : > { %s416_s27 = sshll.u32 %s2714_s20, 4  ;;  %s438_s24 = sshll.u32 %s2715_s12, 4  ;;  %s417_s27 = int_to_ptr.vmem [resolvable:$true] %s416_s27  ;;  %s439_s24 = int_to_ptr.vmem [resolvable:$true] %s438_s24 }
  0x4d   : > { %s2476_s30 = scalar_lea.vmem %s417_s27, 16  ;;  %s2483_s3 = scalar_lea.vmem %s417_s27, 32 }
  0x4e   : > { %p2477_p9 = scmp.ne.s32.totalorder %s417_s27, %s2476_s30  ;;  %p2484_p2 = scmp.lt.s32.totalorder %s417_s27, %s417_s27 }
  0x4f   : > { %p2485_p4 = scmp.lt.s32.totalorder %s2483_s3, %s2476_s30 }
  0x50   : > { %p2479_p11 = pnand %p2477_p9, %p2894_p1 }
  0x51   : > { %p2486_p5 = por %p2485_p4, %p2484_p2 }
  0x52   : > { %p2480_p13 = pneg %p2479_p11 }
  0x54   : > { %p2487_p8 = pnand %p2486_p5, %p2480_p13 }
  0x56   : > { %2490 = shalt.err (!%p2487_p8)
}
  0x57   : > { %2192 = dma.hbm_to_vmem [thread:$0]  (!%p2888_p0), %s3291_s2, 16, %s417_s27, [#allocation13]  }
  0x58   : > { %s2502_s16 = scalar_lea.vmem %s439_s24, 16  ;;  %s2509_s29 = scalar_lea.vmem %s439_s24, 32 }
  0x59   : > { %p2503_p6 = scmp.ne.s32.totalorder %s439_s24, %s2502_s16  ;;  %p2510_p12 = scmp.lt.s32.totalorder %s439_s24, %s439_s24 }
  0x5a   : > { %p2511_p7 = scmp.lt.s32.totalorder %s2509_s29, %s2502_s16 }
  0x5b   : > { %p2505_p3 = pnand %p2503_p6, %p2894_p1 }
  0x5c   : > { %p2512_p9 = por %p2511_p7, %p2510_p12 }
  0x5d   : > { %p2506_p10 = pneg %p2505_p3 }
  0x5f   : > { %p2513_p11 = pnand %p2512_p9, %p2506_p10 }
  0x61   : > { %2516 = shalt.err (!%p2513_p11)
}
  0x62   : > { %2198 = dma.hbm_to_vmem [thread:$0]  (!%p2888_p0), %s3293_s4, 16, %s439_s24, [#allocation16]  }
  0x63   : > { %s2716_s12 = smov [#allocation20]   ;;  %s2717_s30 = smov [#allocation23]  }
  0x64   : > { %s462_s27 = sshll.u32 %s2716_s12, 4  ;;  %s484_s3 = sshll.u32 %s2717_s30, 4  ;;  %s463_s27 = int_to_ptr.vmem [resolvable:$true] %s462_s27  ;;  %s485_s3 = int_to_ptr.vmem [resolvable:$true] %s484_s3 }
  0x65   : > { %s2528_s18 = scalar_lea.vmem %s463_s27, 16  ;;  %s2535_s25 = scalar_lea.vmem %s463_s27, 32 }
  0x66   : > { %p2529_p13 = scmp.ne.s32.totalorder %s463_s27, %s2528_s18  ;;  %p2536_p5 = scmp.lt.s32.totalorder %s463_s27, %s463_s27 }
  0x67   : > { %p2537_p8 = scmp.lt.s32.totalorder %s2535_s25, %s2528_s18 }
  0x68   : > { %p2531_p2 = pnand %p2529_p13, %p2894_p1 }
  0x69   : > { %p2538_p6 = por %p2537_p8, %p2536_p5 }
  0x6a   : > { %p2532_p4 = pneg %p2531_p2 }
  0x6c   : > { %p2539_p3 = pnand %p2538_p6, %p2532_p4 }
  0x6e   : > { %2542 = shalt.err (!%p2539_p3)
}
  0x6f   : > { %2204 = dma.hbm_to_vmem [thread:$0]  (!%p2888_p0), %s3295_s6, 16, %s463_s27, [#allocation19]  }
  0x70   : > { %s2554_s29 = scalar_lea.vmem %s485_s3, 16  ;;  %s2561_s14 = scalar_lea.vmem %s485_s3, 32 }
  0x71   : > { %p2555_p10 = scmp.ne.s32.totalorder %s485_s3, %s2554_s29  ;;  %p2562_p9 = scmp.lt.s32.totalorder %s485_s3, %s485_s3 }
  0x72   : > { %p2563_p11 = scmp.lt.s32.totalorder %s2561_s14, %s2554_s29 }
  0x73   : > { %p2557_p12 = pnand %p2555_p10, %p2894_p1 }
  0x74   : > { %p2564_p13 = por %p2563_p11, %p2562_p9 }
  0x75   : > { %p2558_p7 = pneg %p2557_p12 }
  0x77   : > { %p2565_p2 = pnand %p2564_p13, %p2558_p7 }
  0x79   : > { %2568 = shalt.err (!%p2565_p2)
}
  0x7a   : > { %2210 = dma.hbm_to_vmem [thread:$0]  (!%p2888_p0), %s3297_s8, 16, %s485_s3, [#allocation22]  }
  0x7b   : > { %s2718_s30 = smov [#allocation24]  }
  0x7c   : > { %s495_s27 = sshll.u32 %s2718_s30, 4  ;;  %s496_s27 = int_to_ptr.vmem [resolvable:$true] %s495_s27 }
  0x7d   : > { %s2580_s18 = scalar_lea.vmem %s496_s27, 16  ;;  %s2587_s25 = scalar_lea.vmem %s496_s27, 32 }
  0x7e   : > { %p2581_p4 = scmp.ne.s32.totalorder %s496_s27, %s2580_s18  ;;  %p2588_p6 = scmp.lt.s32.totalorder %s496_s27, %s496_s27 }
  0x7f   : > { %p2589_p3 = scmp.lt.s32.totalorder %s2587_s25, %s2580_s18 }
  0x80   : > { %p2583_p5 = pnand %p2581_p4, %p2894_p1 }
  0x81   : > { %p2590_p10 = por %p2589_p3, %p2588_p6 }
  0x82   : > { %p2584_p8 = pneg %p2583_p5 }
  0x84   : > { %p2591_p12 = pnand %p2590_p10, %p2584_p8 }
  0x86   : > { %2594 = shalt.err (!%p2591_p12)
}
  0x87   : > { %2213 = dma.hbm_to_vmem [thread:$0]  (!%p2888_p0), %s3298_s9, 16, %s496_s27, [#allocation25]  }
  0x88   : > { %p3339_p7 = scmp.ne.s32.totalorder %s3333_s28, 0 }
  0x89   : > { %p3340_p9 = scmp.ne.s32.totalorder (!%p3339_p7), %s3334_s23, 0 }
  0x8a   : > { %534 = sbr.rel (%p3339_p7) target bundleno = 1351 (0x547), region = 80 }
  0x8f   : > { %2654 = dma.done.wait (%p3340_p9), [#allocation13], 16  }
  0x90   : > { %2656 = vsyncadd (%p3340_p9), [#allocation13], 4294967280 }
  0x91   : > { %2658 = dma.done.wait (%p3340_p9), [#allocation16], 80  }
  0x92   : > { %2660 = vsyncadd (%p3340_p9), [#allocation16], 4294967216 }
  0x93   : > { %2662 = dma.done.wait (%p3340_p9), [#allocation19], 1552  }
  0x94   : > { %2664 = vsyncadd (%p3340_p9), [#allocation19], 4294965744 }
  0x95   : > { %2666 = dma.done.wait (%p3340_p9), [#allocation22], 32  }
  0x96   : > { %2668 = vsyncadd (%p3340_p9), [#allocation22], 4294967264 }
  0x97   : > { %2670 = dma.done.wait (%p3340_p9), [#allocation25], 16  }
  0x98   : > { %2672 = vsyncadd (%p3340_p9), [#allocation25], 4294967280  ;;  %s610_s15 = sand.u32 1, %s2683_s19   ;;  %p613_p0 = scmp.lt.s32.totalorder %s2695_s22, 1  ;;  %v2719_v0 = vmov 0.0   ;;  %vm2720_vm0 = vmmov 0  }
  0x99   : > { %s2980_s28 = sshll.u32 %s610_s15, 3  ;;  %2117 = vmatprep.subr.bf16.mxu1 %v2719_v0  ;;  %2121 = vmatprep.mubr.msk.bf16.mxu1 %vm2720_vm0, %v2719_v0  ;;  %p615_p1 = scmp.lt.s32.totalorder %s2691_s21, 1  ;;  %v2314_v1 = vld [vmem:[%s3290_s1 + $0x8] sm:$0xff]   ;;  %v2315_v2 = vld [vmem:[%s3290_s1] sm:$0xff]   ;;  %vm647_vm1 = vcmask 261120  }
  0x9a   : > { %s614_s23 = scalar_select %p613_p0, %s2695_s22, 1  ;;  %2118 = vmatpush3.bf16.msra.mxu1 %v2314_v1  ;;  %v2060_v5 = vld [vmem:[#allocation12] ss:$0 sm:$0xff] }
  0x9b   : > { %s616_s26 = scalar_select %p615_p1, %s2691_s21, 1  ;;  %2119 = vmatprep.subr.bf16.mxu1 %v2719_v0 }
  0x9c   : > { %s2058_s3 = sshll.u32 %s614_s23, 1  ;;  %s612_s16 = scalar_lea.vmem [#allocation26], %s2980_s28 }
  0x9d   : > { %s618_s29 = sadd.s32 %s2058_s3, %s616_s26  ;;  %p2064_p11 = scmp.ne.s32.totalorder %s2691_s21, 0 }
  0x9e   : > { %s2059_s12 = sshll.u32 %s618_s29, 3  ;;  %2120 = vmatpush3.bf16.msra.mxu1 %v2315_v2 }
  0x9f   : > { %s620_s18 = scalar_lea.vmem %s3289_s0, %s2059_s12 }
  0xa0   : > { %v622_v3 = vld [vmem:[%s620_s18] sm:$0xff] }
  0xa1   : > { %v623_v4 = vpack.c.bf16 %v622_v3, %v622_v3 }
  0xa3   : > { %2122 = vmatmul.mubr.msk.bf16.vlgmr.msra.gmra.mxu1 %vm647_vm1, %v623_v4 }
 0x163   : > { %v685_v6 = vpop.f32.mrf.mxu1 }
 0x164   : > { %v686_v7 = vadd.f32 %v2060_v5, %v685_v6 }
 0x165   : > { %v2123_v8 = vpop.f32.mrf.mxu1  ;;  %694 = sbr.rel (%p2064_p11) target bundleno = 365 (0x16d), region = 116 }
 0x167   : > { %v688_v9 = vpop.f32.mrf.mxu1 }
 0x169   : > { %v2124_v10 = vpop.f32.mrf.mxu1 }
 0x16a   : > { %vm695_vm2 = vcmask 523264   ;;  %v2721_v11 = vmov 0.0  }
 0x16b   : > { %696 = vst.msk [vmem:[#allocation2] sm:$0xff] %vm695_vm2, %v2721_v11  ;;  %697 = vst.msk [vmem:[#allocation8] sm:$0xff] %vm695_vm2, %v2721_v11 }
 0x16c   : > { %698 = vst.msk [vmem:[#allocation8 + $0x8] sm:$0xff] %vm695_vm2, %v2721_v11 }
 0x16d PF: > { %p2065_p13 = scmp.le.s32.totalorder %s2691_s21, 0 }
 0x16f   : > { %702 = sbr.rel (%p2065_p13) target bundleno = 374 (0x176), region = 120 }
 0x174   : > { %v703_v12 = vld [vmem:[#allocation2 + $0xe] sm:$0x3]  ;;  %vm704_vm3 = vcmask 517120  }
 0x175   : > { %705 = vst.msk [vmem:[#allocation2 + $0x6] sm:$0x3] %vm704_vm3, %v703_v12 }
 0x176 PF: > { %v2316_v13 = vld [vmem:[#allocation18 + $0x4c] ss:$12 sps:$4 sm:$0xff]   ;;  %2125 = vmatprep.subr.bf16.mxu0 %v2719_v0  ;;  %2133 = vmatprep.mubr.msk.bf16.mxu0 %vm2720_vm0, %v2719_v0  ;;  %vm706_vm4 = vcmask 523264   ;;  %v2318_v14 = vld [vmem:[#allocation18 + $0x48] ss:$12 sps:$4 sm:$0xff]   ;;  %v2722_v15 = vmov 0   ;;  %v1061_v12 = vlaneseq }
 0x177   : > { %862 = vmatprep.mubr.bf16.mxu1 %v2722_v15  ;;  %707 = vst.msk [vmem:[#allocation2 + $0x8] sm:$0xff] %vm706_vm4, %v686_v7  ;;  %838 = vmatprep.subr.bf16.mxu1 %v2316_v13  ;;  %v2319_v16 = vld [vmem:[#allocation18 + $0x50] ss:$12 sps:$4 sm:$0xff]   ;;  %v2320_v17 = vld [vmem:[#allocation18 + $0x34] ss:$12 sps:$4 sm:$0xff]   ;;  %vm931_vm5 = vcmask 130048  }
 0x178   : > { %839 = vmatpush1.bf16.msra.mxu1 %v2318_v14  ;;  %v2322_v18 = vld [vmem:[#allocation18 + $0x30] ss:$12 sps:$4 sm:$0xff]   ;;  %2126 = vmatpush3.bf16.msra.mxu0 %v2319_v16  ;;  %v2323_v19 = vld [vmem:[#allocation18 + $0x38] ss:$12 sps:$4 sm:$0xff]   ;;  %v2327_v22 = vld [vmem:[#allocation18 + $0x20] ss:$12 sps:$4 sm:$0xff]  }
 0x179   : > { %840 = vmatprep.subr.bf16.mxu1 %v2320_v17  ;;  %2127 = vmatprep.subr.bf16.mxu0 %v2719_v0  ;;  %v2324_v20 = vld [vmem:[#allocation18 + $0x1c] ss:$12 sps:$4 sm:$0xff]   ;;  %v2326_v21 = vld [vmem:[#allocation18 + $0x18] ss:$12 sps:$4 sm:$0xff]   ;;  %v2330_v24 = vld [vmem:[#allocation18] ss:$12 sps:$4 sm:$0xff]  }
 0x17a   : > { %v2328_v23 = vld [vmem:[#allocation18 + $0x4] ss:$12 sps:$4 sm:$0xff]   ;;  %v2067_v25 = vld [vmem:[#allocation17] ss:$0 sm:$0xff]  ;;  %v2066_v27 = vld [vmem:[#allocation15] ss:$0 sm:$0xff] }
 0x17b   : > { %v2068_v29 = vld [vmem:[#allocation15 + $0x1] ss:$0 sm:$0xff]  ;;  %v2331_v30 = vld [vmem:[#allocation18 + $0x8] ss:$12 sps:$4 sm:$0xff]   ;;  %v2069_v34 = vld [vmem:[#allocation15 + $0x2] ss:$0 sm:$0xff] }
 0x17c   : > { %841 = vmatpush1.bf16.msra.mxu1 %v2322_v18  ;;  %2128 = vmatpush3.bf16.msra.mxu0 %v2323_v19  ;;  %vm913_vm6 = vcmask 15360   ;;  %v964_v59 = vld [vmem:[#allocation20] sm:$0x1]  ;;  %vm975_vm7 = vcmask 1040384   ;;  %v2087_v8 = vld [vmem:[%s3299_s10] ss:$0 sm:$0xff] }
 0x17d   : > { %842 = vmatprep.subr.bf16.mxu1 %v2324_v20  ;;  %2129 = vmatprep.subr.bf16.mxu0 %v2719_v0  ;;  %v977_v60 = vsel %vm975_vm7, %v964_v59, 0  ;;  %v2085_v11 = vld [vmem:[#allocation23] ss:$0 sm:$0xff]  ;;  %v2086_v16 = vld [vmem:[#allocation24] ss:$0 sm:$0xff]  ;;  %v3025_v19 = vshrl.u32 %v1061_v12, 7 }
 0x17e   : > { %v709_v26 = vld [vmem:[#allocation2 + $0x6] sm:$0xff]  ;;  %s3341_s14 = sld [smem:[#allocation43_spill]]  ;;  %vm1754_vm10 = vcmask 1041409   ;;  %vm1757_vm11 = vcmask 1042434   ;;  %vm1760_vm12 = vcmask 1043459   ;;  %vm1763_vm13 = vcmask 1044484  }
 0x17f   : > { %v723_v28 = vld [vmem:[#allocation2 + $0x7] sm:$0xff]  ;;  %v715_v31 = vmul.f32 %v2066_v27, %v709_v26  ;;  %v3032_v26 = vsub.s32 0, %v3025_v19  ;;  %vm1766_vm14 = vcmask 1045509   ;;  %vm1769_vm15 = vcmask 1046534   ;;  %s2098_s20 = sshll.u32 %s2695_s22, 1  ;;  %s3342_s18 = sld [smem:[#allocation44_spill]] }
 0x180   : > { %843 = vmatpush1.bf16.msra.mxu1 %v2326_v21  ;;  %v729_v32 = vmul.f32 %v2068_v29, %v723_v28  ;;  %v731_v33 = vld [vmem:[#allocation2 + $0x8] sm:$0xff]  ;;  %2130 = vmatpush3.bf16.msra.mxu0 %v2327_v22  ;;  %v1223_v22 = vsub.s32 1, %v3025_v19  ;;  %s1875_s12 = sadd.s32 %s2691_s21, %s2098_s20  ;;  %s1879_s24 = sshll.u32 %s612_s16, 4  ;;  %s3234_s24 = int_to_ptr.vmem [resolvable:$true] %s1879_s24 }
 0x181   : > { %844 = vmatprep.subr.bf16.mxu1 %v2328_v23  ;;  %2131 = vmatprep.subr.bf16.mxu0 %v2719_v0  ;;  %v722_v35 = vadd.f32 %v2067_v25, %v715_v31  ;;  %v737_v36 = vmul.f32 %v2069_v34, %v731_v33  ;;  %v1234_v25 = vsub.s32 2, %v3025_v19  ;;  %v1245_v33 = vsub.s32 3, %v3025_v19  ;;  %s2099_s25 = sshll.u32 %s1875_s12, 7  ;;  %s3343_s3 = sld [smem:[#allocation45_spill]] }
 0x182   : > { %s1864_s21 = scalar_lea.sflag [#allocation14], %s610_s15  ;;  %s2595_s22 = scalar_lea.vmem %s3234_s24, 128 }
 0x183   : > { %v730_v37 = vadd.f32 %v729_v32, %v722_v35  ;;  %v1256_v35 = vsub.s32 4, %v3025_v19  ;;  %p2596_p2 = scmp.ne.s32.totalorder %s3234_s24, %s2595_s22  ;;  %p3344_p4 = scmp.ne.s32.totalorder %s3329_s17, 0 }
 0x184   : > { %845 = vmatpush1.bf16.msra.mxu1 %v2330_v24  ;;  %2132 = vmatpush3.bf16.msra.mxu0 %v2331_v30 }
 0x185   : > { %2137 = vmatprep.subr.bf16.mxu1 %v2719_v0  ;;  %v738_v38 = vadd.f32 %v737_v36, %v730_v37  ;;  %2143 = vmatprep.subr.bf16.mxu0 %v2719_v0  ;;  %v1267_v37 = vsub.s32 5, %v3025_v19  ;;  %p2597_p5 = pnand %p2596_p2, %p3344_p4 }
 0x187   : > { %v2070_v39 = vmul.f32 -1.442695, %v738_v38  ;;  %s3232_s29 = scalar_lea.hbm %s3343_s3, %s2099_s25  ;;  %p2598_p8 = pneg %p2597_p5 }
 0x189   : > { %2337 = vpow2.f32 %v2070_v39  ;;  %v1278_v39 = vsub.s32 6, %v3025_v19 }
 0x196   : > { %v2338_v40 = vpop.eup %2337 }
 0x197   : > { %v742_v41 = vadd.f32 1.0, %v2338_v40 }
 0x199   : > { %2339 = vrcp.f32 %v742_v41  ;;  %v1289_v41 = vsub.s32 7, %v3025_v19 }
 0x1a6   : > { %v2340_v42 = vpop.eup %2339 }
 0x1a7   : > { %v745_v43 = vmul.f32 %v2340_v42, %v738_v38 }
 0x1a9   : > { %v746_v44 = vpack.c.bf16 %v745_v43, %v745_v43  ;;  %1037 = vst.msk [vmem:[#allocation3] sm:$0xff] %vm706_vm4, %v745_v43 }
 0x1ab   : > { %2083 = vmatmul.mubr.msk.bf16.vlgmr.msra.gmra.mxu1 %vm706_vm4, %v746_v44  ;;  %2134 = vmatmul.mubr.msk.bf16.vlgmr.msra.gmra.mxu0 %vm706_vm4, %v746_v44 }
 0x1ac   : > { %2139 = vmatprep.mubr.msk.bf16.mxu1 %vm2720_vm0, %v2719_v0  ;;  %2151 = vmatprep.mubr.msk.bf16.mxu0 %vm2720_vm0, %v2719_v0  ;;  %vm1772_vm0 = vcmask 1047559  }
 0x1ad   : > { %2138 = vmatpush3.bf16.msra.mxu1 %v977_v60 }
 0x26b   : > { %v864_v45 = vpop.f32.mrf.mxu1  ;;  %v905_v46 = vpop.f32.mrf.mxu0 }
 0x26c   : > { %v948_v47 = vmul.f32 %v905_v46, %v905_v46  ;;  %v912_v48 = vmul.f32 %v864_v45, %v864_v45 }
 0x26d   : > { %v866_v49 = vpop.f32.mrf.mxu1  ;;  %v2135_v50 = vpop.f32.mrf.mxu0 }
 0x26e   : > { %v930_v51 = vmul.f32 %v866_v49, %v866_v49  ;;  %v949_v52 = vsel %vm931_vm5, %v948_v47, 0.0  ;;  %v914_v53 = vsel %vm913_vm6, %v912_v48, 0.0  ;;  %v2333_v48 = vld [vmem:[%s3302_s13 + $0x18] sm:$0xff]   ;;  %v2088_v50 = vld [vmem:[#allocation21] ss:$0 sm:$0xff] }
 0x26f   : > { %950 = vadd.xlane.f32.xlu1 %v949_v52  ;;  %915 = vadd.xlane.f32.xlu0 %v914_v53  ;;  %v868_v54 = vpop.f32.mrf.mxu1  ;;  %v908_v55 = vpop.f32.mrf.mxu0  ;;  %v2335_v52 = vld [vmem:[%s3302_s13 + $0x8] sm:$0xff]  }
 0x270   : > { %v932_v58 = vsel %vm931_vm5, %v930_v51, 0.0  ;;  %2144 = vmatpush3.bf16.msra.mxu0 %v2333_v48 }
 0x271   : > { %v869_v56 = vpop.f32.mrf.mxu1  ;;  %v2136_v57 = vpop.f32.mrf.mxu0  ;;  %2145 = vmatprep.subr.bf16.mxu0 %v2719_v0 }
 0x272   : > { %v2336_v57 = vld [vmem:[%s3302_s13] sm:$0xff]  }
 0x273   : > { %933 = vadd.xlane.f32.xlu0 %v932_v58 }
 0x2f8   : > { %v951_v61 = vpop.xlane.xlu1 %950  ;;  %v916_v62 = vpop.xlane.xlu0 %915 }
 0x2f9   : > { %v952_v63 = vmul.f32 0.0625, %v951_v61  ;;  %v918_v1 = vmul.f32 0.5, %v916_v62 }
 0x2fb   : > { %v953_v2 = vadd.f32 1e-05, %v952_v63  ;;  %v919_v3 = vadd.f32 1e-05, %v918_v1 }
 0x2fc   : > { %v934_v4 = vpop.xlane.xlu0 %933 }
 0x2fd   : > { %2341 = vrsqrt.f32 %v953_v2  ;;  %v936_v5 = vmul.f32 0.0625, %v934_v4 }
 0x2fe   : > { %2343 = vrsqrt.f32 %v919_v3 }
 0x2ff   : > { %v937_v6 = vadd.f32 1e-05, %v936_v5 }
 0x301   : > { %2345 = vrsqrt.f32 %v937_v6 }
 0x30a   : > { %v2342_v7 = vpop.eup %2341 }
 0x30b   : > { %v2344_v9 = vpop.eup %2343  ;;  %v955_v10 = vmul.f32 %v2342_v7, %v905_v46 }
 0x30c   : > { %v921_v13 = vmul.f32 %v2344_v9, %v864_v45 }
 0x30d   : > { %v962_v14 = vmul.f32 %v2087_v8, %v955_v10  ;;  %v1042_v8 = vld [vmem:[%s3300_s11 + $0x8] sm:$0xff] }
 0x30e   : > { %v2346_v15 = vpop.eup %2345  ;;  %v928_v17 = vmul.f32 %v2085_v11, %v921_v13 }
 0x30f   : > { %1040 = vst.msk [vmem:[#allocation6] sm:$0xff] %vm931_vm5, %v962_v14  ;;  %v939_v18 = vmul.f32 %v2346_v15, %v866_v49  ;;  %v2334_v49 = vld [vmem:[%s3302_s13 + $0x10] sm:$0xff]   ;;  %v1045_v14 = vmul.f32 1.442695, %v1042_v8 }
 0x310   : > { %v963_v20 = vpack.c.bf16 %v928_v17, %v928_v17  ;;  %2146 = vmatpush3.bf16.msra.mxu0 %v2334_v49 }
 0x311   : > { %v946_v21 = vmul.f32 %v2086_v16, %v939_v18  ;;  %2147 = vmatprep.subr.bf16.mxu0 %v2719_v0  ;;  %v2723_v18 = vmov 1966171168  }
 0x312   : > { %2140 = vmatmul.mubr.msk.bf16.vlgmr.msra.gmra.mxu1 %vm913_vm6, %v963_v20  ;;  %v1059_v20 = vunpack.c.l.s4 %v2723_v18 }
 0x313   : > { %1039 = vst.msk [vmem:[#allocation5] sm:$0xff] %vm931_vm5, %v946_v21 }
 0x314   : > { %2148 = vmatpush3.bf16.msra.mxu0 %v2335_v52 }
 0x315   : > { %2149 = vmatprep.subr.bf16.mxu0 %v2719_v0  ;;  %v1041_v0 = vld [vmem:[%s3300_s11] sm:$0xff] }
 0x316   : > { %v1055_v23 = vld [vmem:[#allocation6] sm:$0xff]  ;;  %v1043_v10 = vmul.f32 1.442695, %v1041_v0 }
 0x317   : > { %v1536_v24 = vrot.slane %v1055_v23, %v1223_v22  ;;  %v1547_v27 = vrot.slane %v1055_v23, %v1234_v25  ;;  %v1525_v29 = vrot.slane %v1055_v23, %v3032_v26  ;;  %v1558_v43 = vrot.slane %v1055_v23, %v1245_v33 }
 0x318   : > { %v1569_v44 = vrot.slane %v1055_v23, %v1256_v35  ;;  %v1580_v45 = vrot.slane %v1055_v23, %v1267_v37  ;;  %v1591_v46 = vrot.slane %v1055_v23, %v1278_v39  ;;  %v1602_v47 = vrot.slane %v1055_v23, %v1289_v41  ;;  %2150 = vmatpush3.bf16.msra.mxu0 %v2336_v57 }
 0x319   : > { %1538 = vbcast.lane.b32.xlu1 %v1536_v24, 256  ;;  %1542 = vbcast.lane.b32.xlu0 %v1536_v24, 264 }
 0x31a   : > { %v1054_v28 = vld [vmem:[#allocation5] sm:$0xff] }
 0x31b   : > { %v1213_v30 = vrot.slane %v1054_v28, %v3032_v26  ;;  %v1235_v31 = vrot.slane %v1054_v28, %v1234_v25  ;;  %v1224_v32 = vrot.slane %v1054_v28, %v1223_v22  ;;  %v1246_v34 = vrot.slane %v1054_v28, %v1245_v33 }
 0x31c   : > { %v1257_v36 = vrot.slane %v1054_v28, %v1256_v35  ;;  %v1268_v38 = vrot.slane %v1054_v28, %v1267_v37  ;;  %v1279_v40 = vrot.slane %v1054_v28, %v1278_v39  ;;  %v1290_v42 = vrot.slane %v1054_v28, %v1289_v41 }
 0x31d   : > { %1549 = vbcast.lane.b32.xlu1 %v1547_v27, 256  ;;  %1553 = vbcast.lane.b32.xlu0 %v1547_v27, 264  ;;  %v1060_v27 = vunpack.c.0.s8 %v1059_v20 }
 0x31f   : > { %v3084_v28 = vsub.s32 %v1060_v27, %v3025_v19 }
 0x321   : > { %1527 = vbcast.lane.b32.xlu1 %v1525_v29, 256  ;;  %1219 = vbcast.lane.b32.xlu0 %v1213_v30, 264 }
 0x325   : > { %1531 = vbcast.lane.b32.xlu0 %v1525_v29, 264  ;;  %1215 = vbcast.lane.b32.xlu1 %v1213_v30, 256  ;;  %v3086_v29 = vld [vmem:[#allocation3] sm:$0xff] }
 0x329   : > { %1241 = vbcast.lane.b32.xlu0 %v1235_v31, 264  ;;  %1226 = vbcast.lane.b32.xlu1 %v1224_v32, 256 }
 0x32d   : > { %1252 = vbcast.lane.b32.xlu0 %v1246_v34, 264  ;;  %1230 = vbcast.lane.b32.xlu1 %v1224_v32, 264 }
 0x331   : > { %1263 = vbcast.lane.b32.xlu0 %v1257_v36, 264  ;;  %1237 = vbcast.lane.b32.xlu1 %v1235_v31, 256 }
 0x335   : > { %1274 = vbcast.lane.b32.xlu0 %v1268_v38, 264  ;;  %1248 = vbcast.lane.b32.xlu1 %v1246_v34, 256 }
 0x339   : > { %1285 = vbcast.lane.b32.xlu0 %v1279_v40, 264  ;;  %1259 = vbcast.lane.b32.xlu1 %v1257_v36, 256 }
 0x33d   : > { %1296 = vbcast.lane.b32.xlu0 %v1290_v42, 264  ;;  %1270 = vbcast.lane.b32.xlu1 %v1268_v38, 256 }
 0x341   : > { %1564 = vbcast.lane.b32.xlu0 %v1558_v43, 264  ;;  %1281 = vbcast.lane.b32.xlu1 %v1279_v40, 256 }
 0x345   : > { %1575 = vbcast.lane.b32.xlu0 %v1569_v44, 264  ;;  %1292 = vbcast.lane.b32.xlu1 %v1290_v42, 256 }
 0x349   : > { %1586 = vbcast.lane.b32.xlu0 %v1580_v45, 264  ;;  %1560 = vbcast.lane.b32.xlu1 %v1558_v43, 256 }
 0x34d   : > { %1597 = vbcast.lane.b32.xlu0 %v1591_v46, 264  ;;  %1571 = vbcast.lane.b32.xlu1 %v1569_v44, 256 }
 0x351   : > { %1608 = vbcast.lane.b32.xlu0 %v1602_v47, 264  ;;  %1582 = vbcast.lane.b32.xlu1 %v1580_v45, 256 }
 0x355   : > { %1593 = vbcast.lane.b32.xlu1 %v1591_v46, 256 }
 0x359   : > { %1604 = vbcast.lane.b32.xlu1 %v1602_v47, 256 }
 0x38b   : > { %v3056_v61 = vpop.permute.xlu1 %1538  ;;  %v3060_v2 = vpop.permute.xlu0 %1542 }
 0x38f   : > { %v3058_v62 = vpop.permute.xlu1 %1549  ;;  %v3064_v5 = vpop.permute.xlu0 %1553 }
 0x393   : > { %v3062_v3 = vpop.permute.xlu1 %1527  ;;  %v3074_v12 = vpop.permute.xlu0 %1219 }
 0x397   : > { %v3066_v6 = vpop.permute.xlu1 %1215  ;;  %v3078_v23 = vpop.permute.xlu0 %1531 }
 0x39b   : > { %v3076_v13 = vpop.permute.xlu1 %1226  ;;  %v3088_v30 = vpop.permute.xlu0 %1241 }
 0x39f   : > { %v3080_v24 = vpop.permute.xlu1 %1230  ;;  %v3096_v41 = vpop.permute.xlu0 %1252 }
 0x3a3   : > { %v3090_v31 = vpop.permute.xlu1 %1237 }
 0x3a7   : > { %v3098_v42 = vpop.permute.xlu1 %1248 }
 0x3ab   : > { %v3120_v8 = vpop.permute.xlu1 %1259 }
 0x3d2   : > { %v1013_v51 = vpop.f32.mrf.mxu1 }
 0x3d3   : > { %v1014_v53 = vadd.f32 %v2088_v50, %v1013_v51 }
 0x3d4   : > { %v2141_v54 = vpop.f32.mrf.mxu1 }
 0x3d5   : > { %v1022_v55 = vand.u32 2147483647, %v1014_v53  ;;  %v1019_v17 = vmax.f32 %v1014_v53, 0.0  ;;  %vm1020_vm9 = vcmp.ne.f32.partialorder %v1014_v53, %v1014_v53 }
 0x3d6   : > { %v1016_v56 = vpop.f32.mrf.mxu1 }
 0x3d7   : > { %v1023_v58 = vsub.f32 0.0, %v1022_v55 }
 0x3d8   : > { %v2142_v59 = vpop.f32.mrf.mxu1 }
 0x3d9   : > { %v1024_v60 = vmul.f32 1.442695, %v1023_v58 }
 0x3db   : > { %2347 = vpow2.f32 %v1024_v60 }
 0x3e8   : > { %v2348_v63 = vpop.eup %2347 }
 0x3e9   : > { %v1026_v1 = vadd.f32 1.0, %v2348_v63  ;;  %v1029_v4 = vmul.f32 -0.5, %v2348_v63  ;;  %v1032_v9 = vand.u32 2147483647, %v2348_v63 }
 0x3eb   : > { %2349 = vlog2.f32 %v1026_v1  ;;  %v1030_v7 = vadd.f32 1.0, %v1029_v4  ;;  %vm1033_vm8 = vcmp.lt.f32.partialorder %v1032_v9, 0.0004427343 }
 0x3ec   : > { %2351 = vpow2.f32 %v1043_v10 }
 0x3ed   : > { %v1031_v16 = vmul.f32 %v2348_v63, %v1030_v7  ;;  %2353 = vpow2.f32 %v1045_v14  ;;  %v3118_v7 = vpop.permute.xlu0 %1263 }
 0x3f8   : > { %v2350_v11 = vpop.eup %2349 }
 0x3f9   : > { %v1028_v15 = vmul.f32 0.6931472, %v2350_v11  ;;  %v2352_v33 = vpop.eup %2351 }
 0x3fa   : > { %v2354_v37 = vpop.eup %2353  ;;  %v1047_v43 = vsub.f32 0.0, %v2352_v33 }
 0x3fb   : > { %v1034_v21 = vsel %vm1033_vm8, %v1031_v16, %v1028_v15  ;;  %v1048_v49 = vsub.f32 0.0, %v2354_v37 }
 0x3fc   : > { %v1035_v22 = vadd.f32 %v1034_v21, %v1019_v17 }
 0x3fe   : > { %v1036_v25 = vsel %vm1020_vm9, %v1014_v53, %v1035_v22 }
 0x3ff   : > { %1038 = vst.msk [vmem:[#allocation4] sm:$0xff] %vm706_vm4, %v1036_v25 }
 0x406   : > { %v1053_v32 = vld [vmem:[#allocation4] sm:$0xff] }
 0x407   : > { %v1057_v34 = vcombine.high %v1053_v32, %v1053_v32  ;;  %v1064_v35 = vrot.slane %v1053_v32, %v3084_v28  ;;  %v1298_v36 = vmul.f32 %v1053_v32, %v3086_v29 }
 0x409   : > { %v1071_v38 = vrot.slane %v1057_v34, %v3084_v28  ;;  %v1072_v39 = vcombine.high %v1064_v35, %v1064_v35  ;;  %v1080_v19 = vrot.slane %v1064_v35, %v3084_v28  ;;  %v1300_v40 = vcombine.high %v1298_v36, %v1298_v36 }
 0x40a   : > { %v3101_v44 = vrot.slane %v1298_v36, %v3084_v28 }
 0x40b   : > { %v1073_v45 = vcombine.high %v1071_v38, %v1071_v38  ;;  %v1087_v46 = vrot.slane %v1071_v38, %v3084_v28  ;;  %v1094_v47 = vrot.slane %v1072_v39, %v3084_v28  ;;  %v1102_v48 = vcombine.high %v1080_v19, %v1080_v19 }
 0x40c   : > { %v1109_v50 = vrot.slane %v1080_v19, %v3032_v26  ;;  %v1314_v51 = vrot.slane %v1300_v40, %v3084_v28  ;;  %v1315_v52 = vcombine.high %v3101_v44, %v3101_v44  ;;  %v1323_v60 = vrot.slane %v3101_v44, %v3084_v28  ;;  %v1275_v44 = vpop.permute.xlu0 %1274 }
 0x40d   : > { %v1101_v53 = vrot.slane %v1073_v45, %v3084_v28  ;;  %v1103_v54 = vcombine.high %v1087_v46, %v1087_v46  ;;  %v1104_v55 = vcombine.high %v1094_v47, %v1094_v47  ;;  %v1113_v56 = vrot.slane %v1094_v47, %v3032_v26  ;;  %v1271_v45 = vpop.permute.xlu1 %1270 }
 0x40e   : > { %v1117_v57 = vrot.slane %v1102_v48, %v3032_v26  ;;  %v1125_v58 = vrot.slane %v1087_v46, %v3032_v26  ;;  %v1146_v59 = vmul.f32 %v1109_v50, %v1047_v43  ;;  %v1147_v9 = vmul.f32 %v1109_v50, %v1048_v49 }
 0x40f   : > { %v1105_v63 = vcombine.high %v1101_v53, %v1101_v53  ;;  %v1121_v1 = vrot.slane %v1104_v55, %v3032_v26  ;;  %v1129_v4 = vrot.slane %v1101_v53, %v3032_v26  ;;  %v1133_v0 = vrot.slane %v1103_v54, %v3032_v26 }
 0x410   : > { %v1148_v10 = vmul.f32 %v1113_v56, %v1047_v43  ;;  %v1149_v11 = vmul.f32 %v1113_v56, %v1048_v49  ;;  %v1150_v14 = vmul.f32 %v1117_v57, %v1047_v43  ;;  %v1151_v16 = vmul.f32 %v1117_v57, %v1048_v49 }
 0x411   : > { %v1137_v15 = vrot.slane %v1105_v63, %v3032_v26  ;;  %v1152_v17 = vmul.f32 %v1121_v1, %v1047_v43  ;;  %v1153_v18 = vmul.f32 %v1121_v1, %v1048_v49  ;;  %v1154_v20 = vmul.f32 %v1125_v58, %v1047_v43 }
 0x412   : > { %v1155_v21 = vmul.f32 %v1125_v58, %v1048_v49  ;;  %v1156_v22 = vmul.f32 %v1129_v4, %v1047_v43  ;;  %v1157_v25 = vmul.f32 %v1129_v4, %v1048_v49  ;;  %v1158_v27 = vmul.f32 %v1133_v0, %v1047_v43 }
 0x413   : > { %v1159_v32 = vmul.f32 %v1133_v0, %v1048_v49  ;;  %v1160_v33 = vmul.f32 %v1137_v15, %v1047_v43  ;;  %v1162_v34 = vmul.f32 1.442695, %v1146_v59  ;;  %v1161_v35 = vmul.f32 %v1137_v15, %v1048_v49 }
 0x414   : > { %v1164_v36 = vmul.f32 1.442695, %v1147_v9  ;;  %v1166_v37 = vmul.f32 1.442695, %v1148_v10  ;;  %v1168_v38 = vmul.f32 1.442695, %v1149_v11  ;;  %v1316_v40 = vcombine.high %v1314_v51, %v1314_v51  ;;  %v1286_v10 = vpop.permute.xlu0 %1285  ;;  %v1282_v11 = vpop.permute.xlu1 %1281 }
 0x415   : > { %2355 = vpow2.f32 %v1162_v34  ;;  %v1170_v39 = vmul.f32 1.442695, %v1150_v14  ;;  %v1172_v19 = vmul.f32 1.442695, %v1151_v16  ;;  %v1174_v46 = vmul.f32 1.442695, %v1152_v17 }
 0x416   : > { %2357 = vpow2.f32 %v1164_v36  ;;  %v1176_v47 = vmul.f32 1.442695, %v1153_v18  ;;  %v1178_v48 = vmul.f32 1.442695, %v1154_v20  ;;  %v1180_v50 = vmul.f32 1.442695, %v1155_v21 }
 0x417   : > { %2359 = vpow2.f32 %v1166_v37  ;;  %v1182_v53 = vmul.f32 1.442695, %v1156_v22  ;;  %v1184_v54 = vmul.f32 1.442695, %v1157_v25  ;;  %v1186_v43 = vmul.f32 1.442695, %v1158_v27 }
 0x418   : > { %2361 = vpow2.f32 %v1168_v38  ;;  %v1188_v49 = vmul.f32 1.442695, %v1159_v32  ;;  %v1190_v55 = vmul.f32 1.442695, %v1160_v33  ;;  %v1330_v56 = vrot.slane %v1314_v51, %v3084_v28 }
 0x419   : > { %2363 = vpow2.f32 %v1170_v39  ;;  %v1337_v57 = vrot.slane %v1315_v52, %v3084_v28  ;;  %v1344_v58 = vrot.slane %v1316_v40, %v3084_v28  ;;  %v1192_v59 = vmul.f32 1.442695, %v1161_v35  ;;  %v1050_v39 = vld [vmem:[#allocation8] sm:$0xff]  ;;  %v1051_v40 = vld [vmem:[#allocation8 + $0x8] sm:$0xff] }
 0x41a   : > { %2365 = vpow2.f32 %v1172_v19  ;;  %v1345_v63 = vcombine.high %v1323_v60, %v1323_v60  ;;  %v1352_v1 = vrot.slane %v1323_v60, %v3032_v26  ;;  %v1346_v4 = vcombine.high %v1330_v56, %v1330_v56 }
 0x41b   : > { %2367 = vpow2.f32 %v1174_v46  ;;  %v1347_v0 = vcombine.high %v1337_v57, %v1337_v57  ;;  %v1348_v9 = vcombine.high %v1344_v58, %v1344_v58  ;;  %v1356_v14 = vrot.slane %v1337_v57, %v3032_v26 }
 0x41c   : > { %2369 = vpow2.f32 %v1176_v47  ;;  %v1360_v51 = vrot.slane %v1345_v63, %v3032_v26  ;;  %v1368_v52 = vrot.slane %v1330_v56, %v3032_v26  ;;  %v1372_v15 = vrot.slane %v1344_v58, %v3032_v26 }
 0x41d   : > { %2371 = vpow2.f32 %v1178_v48  ;;  %v1364_v28 = vrot.slane %v1347_v0, %v3032_v26  ;;  %v1376_v60 = vrot.slane %v1346_v4, %v3032_v26  ;;  %v1380_v16 = vrot.slane %v1348_v9, %v3032_v26 }
 0x41e   : > { %2373 = vpow2.f32 %v1180_v50  ;;  %v1389_v17 = vmul.f32 %v1352_v1, %v3066_v6  ;;  %v1390_v18 = vmul.f32 %v1352_v1, %v3074_v12  ;;  %v1391_v20 = vmul.f32 %v1356_v14, %v3076_v13 }
 0x41f   : > { %2375 = vpow2.f32 %v1182_v53  ;;  %v1392_v21 = vmul.f32 %v1356_v14, %v3080_v24  ;;  %v1393_v22 = vmul.f32 %v1360_v51, %v3090_v31  ;;  %v1394_v25 = vmul.f32 %v1360_v51, %v3088_v30  ;;  %v1297_v24 = vpop.permute.xlu0 %1296  ;;  %v1293_v30 = vpop.permute.xlu1 %1292 }
 0x420   : > { %2377 = vpow2.f32 %v1184_v54  ;;  %v1395_v27 = vmul.f32 %v1364_v28, %v3098_v42  ;;  %v1396_v32 = vmul.f32 %v1364_v28, %v3096_v41  ;;  %1405 = vst.msk [vmem:[#allocation10] sm:$0xff] %vm706_vm4, %v1389_v17  ;;  %1406 = vst.msk [vmem:[#allocation10 + $0x8] sm:$0xff] %vm706_vm4, %v1390_v18  ;;  %v1397_v26 = vmul.f32 %v1368_v52, %v3120_v8 }
 0x421   : > { %2379 = vpow2.f32 %v1186_v43  ;;  %v1398_v6 = vmul.f32 %v1368_v52, %v3118_v7  ;;  %v1399_v12 = vmul.f32 %v1372_v15, %v1271_v45  ;;  %1407 = vst.msk [vmem:[#allocation10 + $0x10] sm:$0xff] %vm706_vm4, %v1391_v20  ;;  %1408 = vst.msk [vmem:[#allocation10 + $0x18] sm:$0xff] %vm706_vm4, %v1392_v21  ;;  %v1400_v31 = vmul.f32 %v1372_v15, %v1275_v44 }
 0x422   : > { %1409 = vst.msk [vmem:[#allocation10 + $0x20] sm:$0xff] %vm706_vm4, %v1393_v22  ;;  %v2356_v13 = vpop.eup %2355  ;;  %2381 = vpow2.f32 %v1188_v49  ;;  %v1401_v41 = vmul.f32 %v1376_v60, %v1282_v11  ;;  %v1402_v42 = vmul.f32 %v1376_v60, %v1286_v10  ;;  %1410 = vst.msk [vmem:[#allocation10 + $0x28] sm:$0xff] %vm706_vm4, %v1394_v25  ;;  %v1403_v8 = vmul.f32 %v1380_v16, %v1293_v30 }
 0x423   : > { %1411 = vst.msk [vmem:[#allocation10 + $0x30] sm:$0xff] %vm706_vm4, %v1395_v27  ;;  %1412 = vst.msk [vmem:[#allocation10 + $0x38] sm:$0xff] %vm706_vm4, %v1396_v32  ;;  %v2358_v7 = vpop.eup %2357  ;;  %2383 = vpow2.f32 %v1190_v55  ;;  %v1404_v33 = vmul.f32 %v1380_v16, %v1297_v24  ;;  %v1561_v24 = vpop.permute.xlu1 %1560 }
 0x424   : > { %1194 = vst.msk [vmem:[#allocation9] sm:$0xff] %vm706_vm4, %v2356_v13  ;;  %1413 = vst.msk [vmem:[#allocation10 + $0x40] sm:$0xff] %vm706_vm4, %v1397_v26  ;;  %v2360_v34 = vpop.eup %2359  ;;  %2385 = vpow2.f32 %v1192_v59 }
 0x425   : > { %1414 = vst.msk [vmem:[#allocation10 + $0x48] sm:$0xff] %vm706_vm4, %v1398_v6  ;;  %1415 = vst.msk [vmem:[#allocation10 + $0x50] sm:$0xff] %vm706_vm4, %v1399_v12  ;;  %v2362_v35 = vpop.eup %2361 }
 0x426   : > { %1195 = vst.msk [vmem:[#allocation9 + $0x8] sm:$0xff] %vm706_vm4, %v2358_v7  ;;  %1416 = vst.msk [vmem:[#allocation10 + $0x58] sm:$0xff] %vm706_vm4, %v1400_v31  ;;  %v2364_v36 = vpop.eup %2363 }
 0x427   : > { %1417 = vst.msk [vmem:[#allocation10 + $0x60] sm:$0xff] %vm706_vm4, %v1401_v41  ;;  %1418 = vst.msk [vmem:[#allocation10 + $0x68] sm:$0xff] %vm706_vm4, %v1402_v42  ;;  %v2366_v37 = vpop.eup %2365  ;;  %v1425_v54 = vld [vmem:[#allocation10] sm:$0xff]  ;;  %v1426_v49 = vld [vmem:[#allocation10 + $0x8] sm:$0xff]  ;;  %v1565_v42 = vpop.permute.xlu0 %1564 }
 0x428   : > { %1196 = vst.msk [vmem:[#allocation9 + $0x10] sm:$0xff] %vm706_vm4, %v2360_v34  ;;  %1419 = vst.msk [vmem:[#allocation10 + $0x70] sm:$0xff] %vm706_vm4, %v1403_v8  ;;  %v2368_v38 = vpop.eup %2367  ;;  %v1437_v9 = vld [vmem:[#allocation10 + $0x10] sm:$0xff]  ;;  %v1438_v11 = vld [vmem:[#allocation10 + $0x18] sm:$0xff] }
 0x429   : > { %1420 = vst.msk [vmem:[#allocation10 + $0x78] sm:$0xff] %vm706_vm4, %v1404_v33  ;;  %1197 = vst.msk [vmem:[#allocation9 + $0x18] sm:$0xff] %vm706_vm4, %v2362_v35  ;;  %v2370_v19 = vpop.eup %2369  ;;  %v1450_v16 = vld [vmem:[#allocation10 + $0x20] sm:$0xff]  ;;  %v1451_v17 = vld [vmem:[#allocation10 + $0x28] sm:$0xff] }
 0x42a   : > { %1198 = vst.msk [vmem:[#allocation9 + $0x20] sm:$0xff] %vm706_vm4, %v2364_v36  ;;  %1199 = vst.msk [vmem:[#allocation9 + $0x28] sm:$0xff] %vm706_vm4, %v2366_v37  ;;  %v2372_v44 = vpop.eup %2371  ;;  %v1463_v32 = vld [vmem:[#allocation10 + $0x30] sm:$0xff]  ;;  %v1464_v26 = vld [vmem:[#allocation10 + $0x38] sm:$0xff] }
 0x42b   : > { %1200 = vst.msk [vmem:[#allocation9 + $0x30] sm:$0xff] %vm706_vm4, %v2368_v38  ;;  %1201 = vst.msk [vmem:[#allocation9 + $0x38] sm:$0xff] %vm706_vm4, %v2370_v19  ;;  %v1421_v45 = vld [vmem:[#allocation9] sm:$0xff]  ;;  %v2374_v46 = vpop.eup %2373 }
 0x42c   : > { %1202 = vst.msk [vmem:[#allocation9 + $0x40] sm:$0xff] %vm706_vm4, %v2372_v44  ;;  %v1423_v48 = vmul.f32 %v1421_v45, %v1050_v39  ;;  %v2376_v50 = vpop.eup %2375  ;;  %1203 = vst.msk [vmem:[#allocation9 + $0x48] sm:$0xff] %vm706_vm4, %v2374_v46  ;;  %v1476_v36 = vld [vmem:[#allocation10 + $0x40] sm:$0xff]  ;;  %v1477_v19 = vld [vmem:[#allocation10 + $0x48] sm:$0xff] }
 0x42d   : > { %v1422_v47 = vld [vmem:[#allocation9 + $0x8] sm:$0xff]  ;;  %v2378_v43 = vpop.eup %2377  ;;  %1204 = vst.msk [vmem:[#allocation9 + $0x50] sm:$0xff] %vm706_vm4, %v2376_v50 }
 0x42e   : > { %v1424_v53 = vmul.f32 %v1422_v47, %v1051_v40  ;;  %v1427_v55 = vadd.f32 %v1425_v54, %v1423_v48  ;;  %v2380_v56 = vpop.eup %2379  ;;  %1205 = vst.msk [vmem:[#allocation9 + $0x58] sm:$0xff] %vm706_vm4, %v2378_v43  ;;  %v1489_v43 = vld [vmem:[#allocation10 + $0x50] sm:$0xff] }
 0x42f   : > { %v1432_v58 = vld [vmem:[#allocation9 + $0x10] sm:$0xff]  ;;  %v2382_v59 = vpop.eup %2381  ;;  %1206 = vst.msk [vmem:[#allocation9 + $0x60] sm:$0xff] %vm706_vm4, %v2380_v56 }
 0x430   : > { %v1428_v57 = vadd.f32 %v1426_v49, %v1424_v53  ;;  %1429 = vst.msk [vmem:[#allocation11] sm:$0xff] %vm706_vm4, %v1427_v55  ;;  %v1433_v63 = vld [vmem:[#allocation9 + $0x18] sm:$0xff]  ;;  %v1434_v1 = vmul.f32 %v1432_v58, %v1427_v55  ;;  %v2384_v4 = vpop.eup %2383  ;;  %1207 = vst.msk [vmem:[#allocation9 + $0x68] sm:$0xff] %vm706_vm4, %v2382_v59 }
 0x431   : > { %v2386_v10 = vpop.eup %2385  ;;  %1208 = vst.msk [vmem:[#allocation9 + $0x70] sm:$0xff] %vm706_vm4, %v2384_v4  ;;  %v1445_v52 = vld [vmem:[#allocation9 + $0x20] sm:$0xff]  ;;  %v1446_v28 = vld [vmem:[#allocation9 + $0x28] sm:$0xff]  ;;  %v1490_v58 = vld [vmem:[#allocation10 + $0x58] sm:$0xff] }
 0x432   : > { %1430 = vst.msk [vmem:[#allocation11 + $0x8] sm:$0xff] %vm706_vm4, %v1428_v57  ;;  %v1435_v0 = vmul.f32 %v1433_v63, %v1428_v57  ;;  %v1439_v14 = vadd.f32 %v1437_v9, %v1434_v1  ;;  %1209 = vst.msk [vmem:[#allocation9 + $0x78] sm:$0xff] %vm706_vm4, %v2386_v10  ;;  %v1458_v21 = vld [vmem:[#allocation9 + $0x30] sm:$0xff]  ;;  %v1459_v22 = vld [vmem:[#allocation9 + $0x38] sm:$0xff]  ;;  %v1576_v57 = vpop.permute.xlu0 %1575 }
 0x433   : > { %v1471_v31 = vld [vmem:[#allocation9 + $0x40] sm:$0xff]  ;;  %v1472_v7 = vld [vmem:[#allocation9 + $0x48] sm:$0xff] }
 0x434   : > { %v1440_v51 = vadd.f32 %v1438_v11, %v1435_v0  ;;  %1442 = vst.msk [vmem:[#allocation11 + $0x10] sm:$0xff] %vm706_vm4, %v1439_v14  ;;  %v1447_v15 = vmul.f32 %v1445_v52, %v1439_v14  ;;  %v1484_v46 = vld [vmem:[#allocation9 + $0x50] sm:$0xff] }
 0x436   : > { %1443 = vst.msk [vmem:[#allocation11 + $0x18] sm:$0xff] %vm706_vm4, %v1440_v51  ;;  %v1448_v60 = vmul.f32 %v1446_v28, %v1440_v51  ;;  %v1452_v18 = vadd.f32 %v1450_v16, %v1447_v15  ;;  %v1497_v4 = vld [vmem:[#allocation9 + $0x60] sm:$0xff]  ;;  %v1503_v16 = vld [vmem:[#allocation10 + $0x68] sm:$0xff] }
 0x437   : > { %v1610_v12 = vld [vmem:[#allocation11] sm:$0xff]  ;;  %v1498_v10 = vld [vmem:[#allocation9 + $0x68] sm:$0xff] }
 0x438   : > { %v1453_v20 = vadd.f32 %v1451_v17, %v1448_v60  ;;  %1455 = vst.msk [vmem:[#allocation11 + $0x20] sm:$0xff] %vm706_vm4, %v1452_v18  ;;  %v1460_v25 = vmul.f32 %v1458_v21, %v1452_v18  ;;  %v1626_v37 = vmul.f32 %v1610_v12, %v3062_v3  ;;  %v1502_v28 = vld [vmem:[#allocation10 + $0x60] sm:$0xff] }
 0x439   : > { %v1611_v13 = vld [vmem:[#allocation11 + $0x8] sm:$0xff]  ;;  %v1511_v12 = vld [vmem:[#allocation9 + $0x78] sm:$0xff] }
 0x43a   : > { %1456 = vst.msk [vmem:[#allocation11 + $0x28] sm:$0xff] %vm706_vm4, %v1453_v20  ;;  %v1461_v27 = vmul.f32 %v1459_v22, %v1453_v20  ;;  %v1465_v6 = vadd.f32 %v1463_v32, %v1460_v25  ;;  %v1627_v38 = vmul.f32 %v1611_v13, %v3078_v23  ;;  %v1572_v23 = vpop.permute.xlu1 %1571  ;;  %v1642_v55 = vsel %vm706_vm4, %v1626_v37, 0.0  ;;  %v1510_v22 = vld [vmem:[#allocation9 + $0x70] sm:$0xff] }
 0x43b   : > { %v1612_v41 = vld [vmem:[#allocation11 + $0x10] sm:$0xff] }
 0x43c   : > { %v1466_v30 = vadd.f32 %v1464_v26, %v1461_v27  ;;  %1468 = vst.msk [vmem:[#allocation11 + $0x30] sm:$0xff] %vm706_vm4, %v1465_v6  ;;  %v1473_v8 = vmul.f32 %v1471_v31, %v1465_v6  ;;  %v1628_v34 = vmul.f32 %v1612_v41, %v3056_v61  ;;  %v1485_v61 = vld [vmem:[#allocation9 + $0x58] sm:$0xff]  ;;  %v1643_v56 = vsel %vm706_vm4, %v1627_v38, 0.0  ;;  %v1587_v6 = vpop.permute.xlu0 %1586 }
 0x43d   : > { %v1613_v33 = vld [vmem:[#allocation11 + $0x18] sm:$0xff]  ;;  %v1644_v51 = vadd.f32 %v1643_v56, %v1642_v55 }
 0x43e   : > { %1469 = vst.msk [vmem:[#allocation11 + $0x38] sm:$0xff] %vm706_vm4, %v1466_v30  ;;  %v1474_v35 = vmul.f32 %v1472_v7, %v1466_v30  ;;  %v1629_v39 = vmul.f32 %v1613_v33, %v3060_v2  ;;  %v1478_v40 = vadd.f32 %v1476_v36, %v1473_v8  ;;  %v1651_v44 = vsel %vm706_vm4, %v1628_v34, 0.0  ;;  %v1583_v20 = vpop.permute.xlu1 %1582  ;;  %v1516_v34 = vld [vmem:[#allocation10 + $0x78] sm:$0xff] }
 0x43f   : > { %v1614_v47 = vld [vmem:[#allocation11 + $0x20] sm:$0xff]  ;;  %v1645_v31 = vrot.slane %v1644_v51, 4 }
 0x440   : > { %v1479_v45 = vadd.f32 %v1477_v19, %v1474_v35  ;;  %v1652_v48 = vsel %vm706_vm4, %v1629_v39, 0.0  ;;  %1481 = vst.msk [vmem:[#allocation11 + $0x40] sm:$0xff] %vm706_vm4, %v1478_v40  ;;  %v1486_v50 = vmul.f32 %v1484_v46, %v1478_v40  ;;  %v1630_v3 = vmul.f32 %v1614_v47, %v3058_v62 }
 0x441   : > { %v1615_v53 = vld [vmem:[#allocation11 + $0x28] sm:$0xff]  ;;  %v1653_v54 = vadd.f32 %v1652_v48, %v1651_v44 }
 0x442   : > { %1482 = vst.msk [vmem:[#allocation11 + $0x48] sm:$0xff] %vm706_vm4, %v1479_v45  ;;  %v1487_v2 = vmul.f32 %v1485_v61, %v1479_v45  ;;  %v1631_v49 = vmul.f32 %v1615_v53, %v3064_v5  ;;  %v1491_v59 = vadd.f32 %v1489_v43, %v1486_v50  ;;  %v1660_v63 = vsel %vm706_vm4, %v1630_v3, 0.0  ;;  %v1594_v47 = vpop.permute.xlu1 %1593  ;;  %v1598_v3 = vpop.permute.xlu0 %1597 }
 0x443   : > { %v1616_v62 = vld [vmem:[#allocation11 + $0x30] sm:$0xff]  ;;  %v1654_v0 = vrot.slane %v1653_v54, 4  ;;  %v1646_v61 = vadd.f32 %v1645_v31, %v1644_v51 }
 0x444   : > { %v1492_v1 = vadd.f32 %v1490_v58, %v1487_v2  ;;  %v1661_v9 = vsel %vm706_vm4, %v1631_v49, 0.0  ;;  %1494 = vst.msk [vmem:[#allocation11 + $0x50] sm:$0xff] %vm706_vm4, %v1491_v59  ;;  %v1499_v11 = vmul.f32 %v1497_v4, %v1491_v59  ;;  %v1632_v14 = vmul.f32 %v1616_v62, %v1561_v24  ;;  %v2090_v62 = vld [vmem:[%s3341_s14] ss:$0 sm:$0xff]  ;;  %s2724_s14 = smov [#allocation26]  }
 0x445   : > { %v1617_v5 = vld [vmem:[#allocation11 + $0x38] sm:$0xff]  ;;  %v1662_v60 = vadd.f32 %v1661_v9, %v1660_v63  ;;  %v1655_v27 = vadd.f32 %v1654_v0, %v1653_v54  ;;  %s2599_s20 = sshll.u32 %s2724_s14, 4  ;;  %s2600_s20 = int_to_ptr.vmem [resolvable:$false] %s2599_s20 }
 0x446   : > { %1495 = vst.msk [vmem:[#allocation11 + $0x58] sm:$0xff] %vm706_vm4, %v1492_v1  ;;  %v1500_v52 = vmul.f32 %v1498_v10, %v1492_v1  ;;  %v1633_v15 = vmul.f32 %v1617_v5, %v1565_v42  ;;  %v1504_v17 = vadd.f32 %v1502_v28, %v1499_v11  ;;  %v1669_v18 = vsel %vm706_vm4, %v1632_v14, 0.0  ;;  %v1515_v42 = vld [vmem:[#allocation10 + $0x70] sm:$0xff]  ;;  %v1605_v5 = vpop.permute.xlu1 %1604  ;;  %v1609_v28 = vpop.permute.xlu0 %1608  ;;  %s2601_s12 = scalar_lea.vmem %s2600_s20, 256  ;;  %p2602_p6 = scmp.lt.s32.totalorder %s3234_s24, %s2600_s20 }
 0x447   : > { %v1618_v25 = vld [vmem:[#allocation11 + $0x40] sm:$0xff]  ;;  %v1663_v32 = vrot.slane %v1662_v60, 4  ;;  %v1656_v39 = vrot.slane %v1655_v27, 2  ;;  %v1647_v1 = vrot.slane %v1646_v61, 2  ;;  %p2603_p3 = scmp.lt.s32.totalorder %s2601_s12, %s2595_s22 }
 0x448   : > { %v1505_v21 = vadd.f32 %v1503_v16, %v1500_v52  ;;  %v1670_v26 = vsel %vm706_vm4, %v1633_v15, 0.0  ;;  %1507 = vst.msk [vmem:[#allocation11 + $0x60] sm:$0xff] %vm706_vm4, %v1504_v17  ;;  %v1512_v13 = vmul.f32 %v1510_v22, %v1504_v17  ;;  %v1634_v30 = vmul.f32 %v1618_v25, %v1572_v23 }
 0x449   : > { %v1619_v24 = vld [vmem:[#allocation11 + $0x48] sm:$0xff]  ;;  %v1664_v8 = vadd.f32 %v1663_v32, %v1662_v60  ;;  %v1671_v33 = vadd.f32 %v1670_v26, %v1669_v18  ;;  %v1657_v43 = vadd.f32 %v1656_v39, %v1655_v27  ;;  %v1648_v22 = vadd.f32 %v1647_v1, %v1646_v61  ;;  %p2604_p10 = por %p2603_p3, %p2602_p6 }
 0x44a   : > { %1508 = vst.msk [vmem:[#allocation11 + $0x68] sm:$0xff] %vm706_vm4, %v1505_v21  ;;  %v1513_v41 = vmul.f32 %v1511_v12, %v1505_v21  ;;  %v1635_v7 = vmul.f32 %v1619_v24, %v1576_v57  ;;  %v1517_v35 = vadd.f32 %v1515_v42, %v1512_v13  ;;  %v1678_v36 = vsel %vm706_vm4, %v1634_v30, 0.0 }
 0x44b   : > { %v1620_v38 = vld [vmem:[#allocation11 + $0x50] sm:$0xff]  ;;  %v1672_v19 = vrot.slane %v1671_v33, 4  ;;  %v1665_v50 = vrot.slane %v1664_v8, 2  ;;  %v1658_v51 = vrot.slane %v1657_v43, 1  ;;  %p2605_p12 = pnand %p2604_p10, %p2598_p8 }
 0x44c   : > { %v1518_v37 = vadd.f32 %v1516_v34, %v1513_v41  ;;  %v1679_v40 = vsel %vm706_vm4, %v1635_v7, 0.0  ;;  %1776 = vst.msk [vmem:[#allocation8] sm:$0xff] %vm706_vm4, %v1517_v35  ;;  %1520 = vst.msk [vmem:[#allocation11 + $0x70] sm:$0xff] %vm706_vm4, %v1517_v35  ;;  %v1636_v45 = vmul.f32 %v1620_v38, %v1583_v20  ;;  %v1720_v20 = vmul.f32 %v2090_v62, %v3086_v29 }
 0x44d   : > { %v1621_v44 = vld [vmem:[#allocation11 + $0x58] sm:$0xff]  ;;  %v1680_v46 = vadd.f32 %v1679_v40, %v1678_v36  ;;  %v1673_v53 = vadd.f32 %v1672_v19, %v1671_v33  ;;  %v1666_v4 = vadd.f32 %v1665_v50, %v1664_v8  ;;  %v1659_v30 = vadd.f32 %v1658_v51, %v1657_v43 }
 0x44e   : > { %1777 = vst.msk [vmem:[#allocation8 + $0x8] sm:$0xff] %vm706_vm4, %v1518_v37  ;;  %1521 = vst.msk [vmem:[#allocation11 + $0x78] sm:$0xff] %vm706_vm4, %v1518_v37  ;;  %v1637_v48 = vmul.f32 %v1621_v44, %v1587_v6  ;;  %v1687_v23 = vsel %vm706_vm4, %v1636_v45, 0.0  ;;  %v1722_v24 = vrot.slane %v1720_v20, 1  ;;  %v1649_v7 = vrot.slane %v1648_v22, 1 }
 0x44f   : > { %v1681_v54 = vrot.slane %v1680_v46, 4  ;;  %v1622_v2 = vld [vmem:[#allocation11 + $0x60] sm:$0xff]  ;;  %v1674_v49 = vrot.slane %v1673_v53, 2  ;;  %v1667_v25 = vrot.slane %v1666_v4, 1  ;;  %v1723_v33 = vrot.slane %v1720_v20, 2 }
 0x450   : > { %v1688_v55 = vsel %vm706_vm4, %v1637_v48, 0.0  ;;  %v1638_v57 = vmul.f32 %v1622_v2, %v1594_v47  ;;  %v1724_v29 = vrot.slane %v1720_v20, 3  ;;  %v1725_v39 = vrot.slane %v1720_v20, 4 }
 0x451   : > { %v1623_v56 = vld [vmem:[#allocation11 + $0x68] sm:$0xff]  ;;  %v1682_v58 = vadd.f32 %v1681_v54, %v1680_v46  ;;  %v1689_v59 = vadd.f32 %v1688_v55, %v1687_v23  ;;  %v1675_v0 = vadd.f32 %v1674_v49, %v1673_v53  ;;  %v1668_v8 = vadd.f32 %v1667_v25, %v1666_v4 }
 0x452   : > { %v1639_v63 = vmul.f32 %v1623_v56, %v1598_v3  ;;  %v1696_v11 = vsel %vm706_vm4, %v1638_v57, 0.0  ;;  %v1726_v19 = vrot.slane %v1720_v20, 5  ;;  %v1738_v46 = vadd.f32 %v1722_v24, %v1659_v30 }
 0x453   : > { %v1683_v9 = vrot.slane %v1682_v58, 2  ;;  %v1690_v10 = vrot.slane %v1689_v59, 4  ;;  %v1624_v14 = vld [vmem:[#allocation11 + $0x70] sm:$0xff]  ;;  %v1676_v27 = vrot.slane %v1675_v0, 1  ;;  %v1727_v47 = vrot.slane %v1720_v20, 6 }
 0x454   : > { %v1697_v52 = vsel %vm706_vm4, %v1639_v63, 0.0  ;;  %v1640_v60 = vmul.f32 %v1624_v14, %v1605_v5  ;;  %v1739_v48 = vadd.f32 %v1723_v33, %v1668_v8  ;;  %v1650_v61 = vadd.f32 %v1649_v7, %v1648_v22 }
 0x455   : > { %v1625_v15 = vld [vmem:[#allocation11 + $0x78] sm:$0xff]  ;;  %v1684_v16 = vadd.f32 %v1683_v9, %v1682_v58  ;;  %v1691_v17 = vadd.f32 %v1690_v10, %v1689_v59  ;;  %v1698_v18 = vadd.f32 %v1697_v52, %v1696_v11  ;;  %v1677_v34 = vadd.f32 %v1676_v27, %v1675_v0 }
 0x456   : > { %v1641_v21 = vmul.f32 %v1625_v15, %v1609_v28  ;;  %v1705_v6 = vsel %vm706_vm4, %v1640_v60, 0.0  ;;  %v1753_v49 = vrot.slane %v1738_v46, 7  ;;  %v1728_v55 = vrot.slane %v1720_v20, 7 }
 0x457   : > { %v1692_v32 = vrot.slane %v1691_v17, 2  ;;  %v1699_v26 = vrot.slane %v1698_v18, 4  ;;  %v1685_v12 = vrot.slane %v1684_v16, 1  ;;  %v1740_v3 = vadd.f32 %v1724_v29, %v1677_v34 }
 0x458   : > { %v1706_v13 = vsel %vm706_vm4, %v1641_v21, 0.0  ;;  %v1756_v56 = vrot.slane %v1739_v48, 6  ;;  %v1737_v58 = vadd.f32 %v1720_v20, %v1650_v61 }
 0x459   : > { %v1693_v31 = vadd.f32 %v1692_v32, %v1691_v17  ;;  %v1700_v41 = vadd.f32 %v1699_v26, %v1698_v18  ;;  %v1707_v42 = vadd.f32 %v1706_v13, %v1705_v6  ;;  %v1686_v38 = vadd.f32 %v1685_v12, %v1684_v16  ;;  %v2091_v17 = vld [vmem:[%s3342_s18] ss:$0 sm:$0xff] }
 0x45a   : > { %v1759_v63 = vrot.slane %v1740_v3, 5  ;;  %v1755_v62 = vsel %vm1754_vm10, %v1753_v49, %v1737_v58 }
 0x45b   : > { %v1694_v35 = vrot.slane %v1693_v31, 1  ;;  %v1701_v36 = vrot.slane %v1700_v41, 2  ;;  %v1708_v37 = vrot.slane %v1707_v42, 4  ;;  %v1741_v54 = vadd.f32 %v1725_v39, %v1686_v38 }
 0x45c   : > { %v1758_v9 = vsel %vm1757_vm11, %v1756_v56, %v1755_v62 }
 0x45d   : > { %v1695_v40 = vadd.f32 %v1694_v35, %v1693_v31  ;;  %v1702_v44 = vadd.f32 %v1701_v36, %v1700_v41  ;;  %v1709_v45 = vadd.f32 %v1708_v37, %v1707_v42  ;;  %v1762_v1 = vrot.slane %v1741_v54, 4 }
 0x45e   : > { %v1761_v5 = vsel %vm1760_vm12, %v1759_v63, %v1758_v9 }
 0x45f   : > { %v1703_v50 = vrot.slane %v1702_v44, 1  ;;  %v1710_v53 = vrot.slane %v1709_v45, 2  ;;  %v1742_v43 = vadd.f32 %v1726_v19, %v1695_v40  ;;  %v1764_v14 = vsel %vm1763_vm13, %v1762_v1, %v1761_v5 }
 0x461   : > { %v1704_v23 = vadd.f32 %v1703_v50, %v1702_v44  ;;  %v1711_v2 = vadd.f32 %v1710_v53, %v1709_v45  ;;  %v1765_v0 = vrot.slane %v1742_v43, 3 }
 0x463   : > { %v1712_v57 = vrot.slane %v1711_v2, 1  ;;  %v1743_v59 = vadd.f32 %v1727_v47, %v1704_v23  ;;  %v1767_v51 = vsel %vm1766_vm14, %v1765_v0, %v1764_v14 }
 0x465   : > { %v1713_v4 = vadd.f32 %v1712_v57, %v1711_v2  ;;  %v1768_v10 = vrot.slane %v1743_v59, 2 }
 0x467   : > { %v1744_v11 = vadd.f32 %v1728_v55, %v1713_v4  ;;  %v1770_v28 = vsel %vm1769_vm15, %v1768_v10, %v1767_v51 }
 0x469   : > { %v1771_v52 = vrot.slane %v1744_v11, 1 }
 0x46b   : > { %v1773_v15 = vsel %vm1772_vm0, %v1771_v52, %v1770_v28 }
 0x46c   : > { %1775 = vst.msk [vmem:[#allocation7] sm:$0xff] %vm706_vm4, %v1773_v15 }
 0x473   : > { %v1778_v60 = vld [vmem:[#allocation7] sm:$0xff] }
 0x474   : > { %v1779_v16 = vpack.c.bf16 %v1778_v60, %v1778_v60 }
 0x476   : > { %2152 = vmatmul.mubr.msk.bf16.vlgmr.msra.gmra.mxu0 %vm706_vm4, %v1779_v16 }
 0x536   : > { %v1856_v18 = vpop.f32.mrf.mxu0 }
 0x537   : > { %v1857_v20 = vadd.f32 %v2091_v17, %v1856_v18 }
 0x538   : > { %v2153_v21 = vpop.f32.mrf.mxu0 }
 0x539   : > { %1862 = vst.msk [vmem:[%s612_s16] sm:$0xff] %vm647_vm1, %v1857_v20 }
 0x53a   : > { %v1859_v22 = vpop.f32.mrf.mxu0 }
 0x53b   : > { %2608 = shalt.err (!%p2605_p12)
}
 0x53c   : > { %s2609_s28 = scalar_lea.hbm %s3232_s29, 128  ;;  %s2613_s30 = scalar_lea.hbm %s3343_s3, 512 }
 0x53d   : > { %p2610_p7 = scmp.ne.s32.totalorder %s3232_s29, %s2609_s28  ;;  %p2614_p1 = scmp.lt.s32.totalorder %s3232_s29, %s3343_s3 }
 0x53e   : > { %p2615_p11 = scmp.lt.s32.totalorder %s2613_s30, %s2609_s28 }
 0x53f   : > { %p2611_p9 = pnand %p2610_p7, %p3344_p4 }
 0x540   : > { %p2616_p13 = por %p2615_p11, %p2614_p1 }
 0x541   : > { %p2612_p0 = pneg %p2611_p9 }
 0x543   : > { %p2617_p2 = pnand %p2616_p13, %p2612_p0 }
 0x545   : > { %2620 = shalt.err (!%p2617_p2)
}
 0x546   : > { %2187 = dma.vmem_to_hbm [thread:$0]  (%p3344_p4), %s3234_s24, 128, %s3232_s29, %s1864_s21   ;;  %v2154_v25 = vpop.f32.mrf.mxu0 }
 0x547 PF: > { %s3345_s25 = sld [smem:[#allocation37_spill]] }
 0x548   : > { %s3346_s23 = sld [smem:[#allocation33_spill]] }
 0x549   : > { %s3347_s26 = sld [smem:[#allocation40_spill]] }
 0x54d   : > { %p2234_p5 = scmp.ge.s32.totalorder %s3345_s25, 2 }
 0x54e   : > { %s1891_s22 = sand.u32 1, %s3346_s23  }
 0x54f   : > { %p3348_p8 = scmp.ne.s32.totalorder %s3347_s26, 0  ;;  %s1892_s14 = scalar_lea.sflag [#allocation14], %s1891_s22 }
 0x551   : > { %p2215_p6 = pnand %p2234_p5, %p3348_p8 }
 0x553   : > { %p2216_p3 = pneg %p2215_p6 }
 0x555   : > { %2674 = dma.done.wait (%p2216_p3), %s1892_s14, 128  }
 0x556   : > { %2676 = vsyncadd (%p2216_p3), %s1892_s14, 4294967168  ;;  %s33_s25 = sadd.s32 1, %s3345_s25   ;;  %s3349_s17 = sld [smem:[#allocation34_spill]] }
 0x557   : > { %p30_p10 = scmp.ge.s32.totalorder %s33_s25, 6   ;;  %s3350_s20 = sld [smem:[#allocation41_spill]] }
 0x558   : > { %s3351_s21 = sld [smem:[#allocation35_spill]]  ;;  %s3355_s18 = smov %s2683_s19 }
 0x559   : > { %s3352_s22 = sld [smem:[#allocation36_spill]]  ;;  %32 = sbr.rel (!%p30_p10) target bundleno = 15 (0xf), region = 177 }
 0x55a   : > { %s3353_s23 = sld [smem:[#allocation38_spill]] }
 0x55b   : > { %s3354_s24 = sld [smem:[#allocation39_spill]] }
 0x55c   : > { %s3356_s19 = smov %s3349_s17 }
 0x55e   :  { %1897 = vsyncpa [#allocation13], 1 }
 0x55f   :  { %1899 = vsyncpa [#allocation13 + $0x1], 1 }
 0x560   :  { %1900 = vsyncpa [#allocation16], 1 }
 0x561   :  { %1901 = vsyncpa [#allocation19], 1 }
 0x562   :  { %1902 = vsyncpa [#allocation22], 1 }
 0x563   :  { %1903 = vsyncpa [#allocation25], 1 }
 0x564   :  { %1904 = vsyncpa [#allocation14], 1 }
 0x565   :  { %1906 = vsyncpa [#allocation14 + $0x1], 1 }

</bundles_post_ra>
